<compile_context>
chip_gen: v5e
topology: v5e:2x2
jax: 0.10.0
libtpu: 0.0.40
codegen_flags: <defaults>
</compile_context>

<pallas_src>
import jax
import jax.numpy as jnp
import numpy as np
from jax.experimental import pallas as pl
from jax.experimental.pallas import tpu as pltpu

IMG_SIZE = 16
N_LAYERS = 2
CONV_CHANNELS = [3, 16, 32]
FC_UNITS = 64
BN_EPS = 1e-5


# --------------------------------- fused kernel --------------------------------- #

def _fused_cnn_kernel(x_ref, w1_ref, b1_ref, w2_ref, b2_ref,
                      fw1_ref, fb1_ref, fw2_ref, fb2_ref, o_ref):
    bt = x_ref.shape[2]
    f32 = jnp.float32

    # ---------------- conv block 1: 3x3 conv (pad 1) + folded BN + ReLU + 2x2 max-pool -------------
    # x_ref: (2, 9, bt, 54) bf16 = (row parity, row-pair index, sample, padded row flattened (w,c)).
    # Rows of every matmul are ordered (spatial, sample) so all later slices stay vreg-aligned.
    e0 = x_ref[0, 0:8, :, :].reshape(8 * bt, 54)     # padded image rows 2i
    o0 = x_ref[1, 0:8, :, :].reshape(8 * bt, 54)     # rows 2i + 1
    e1 = x_ref[0, 1:9, :, :].reshape(8 * bt, 54)     # rows 2i + 2
    o1 = x_ref[1, 1:9, :, :].reshape(8 * bt, 54)     # rows 2i + 3
    w10, w11, w12 = w1_ref[0], w1_ref[1], w1_ref[2]  # (54, 256) banded, bf16
    b1 = b1_ref[...]                                  # (1, 256) f32

    y_ev = (jnp.dot(e0, w10, preferred_element_type=f32)
            + jnp.dot(o0, w11, preferred_element_type=f32)
            + jnp.dot(e1, w12, preferred_element_type=f32))          # conv rows h = 2i
    y_od = (jnp.dot(o0, w10, preferred_element_type=f32)
            + jnp.dot(e1, w11, preferred_element_type=f32)
            + jnp.dot(o1, w12, preferred_element_type=f32))          # conv rows h = 2i + 1
    h1 = jnp.maximum(jnp.maximum(y_ev + b1, 0.0), jnp.maximum(y_od + b1, 0.0))   # ReLU + h-pool
    p1 = jnp.maximum(h1[:, :128], h1[:, 128:])       # w-pool; (8*bt, 128), rows (i, n), lanes (j, c1)

    # ---------------- conv block 2: padding/dx folded into banded weights; same pooling trick ------
    zero = jnp.zeros((bt, 128), f32)
    row = lambda i: p1[i * bt:(i + 1) * bt, :]       # aligned row-block slices (bt multiple of 16)
    t_a = jnp.concatenate([zero, row(1), row(3), row(5)], axis=0).astype(jnp.bfloat16)   # rows 2r-1
    t_b = jnp.concatenate([row(0), row(2), row(4), row(6)], axis=0).astype(jnp.bfloat16)  # rows 2r
    t_c = jnp.concatenate([row(1), row(3), row(5), row(7)], axis=0).astype(jnp.bfloat16)  # rows 2r+1
    t_d = jnp.concatenate([row(2), row(4), row(6), zero], axis=0).astype(jnp.bfloat16)    # rows 2r+2
    w20, w21, w22 = w2_ref[0], w2_ref[1], w2_ref[2]  # (128, 256) banded, bf16
    b2 = b2_ref[...]                                  # (1, 256) f32

    y2_ev = (jnp.dot(t_a, w20, preferred_element_type=f32)
             + jnp.dot(t_b, w21, preferred_element_type=f32)
             + jnp.dot(t_c, w22, preferred_element_type=f32))        # conv rows o = 2r
    y2_od = (jnp.dot(t_b, w20, preferred_element_type=f32)
             + jnp.dot(t_c, w21, preferred_element_type=f32)
             + jnp.dot(t_d, w22, preferred_element_type=f32))        # conv rows o = 2r + 1
    h2 = jnp.maximum(jnp.maximum(y2_ev + b2, 0.0), jnp.maximum(y2_od + b2, 0.0))
    p2 = jnp.maximum(h2[:, :128], h2[:, 128:])       # (4*bt, 128), rows (r, n), lanes (j2, c2)

    # ---------------- FC head: 4 accumulating matmuls replace the lane-concat flatten --------------
    p2b = p2.astype(jnp.bfloat16)
    acc = fb1_ref[...]                                # (1, 64) f32, broadcasts over samples
    for r in range(4):
        acc = acc + jnp.dot(p2b[r * bt:(r + 1) * bt, :],
                            fw1_ref[r * 128:(r + 1) * 128, :],
                            preferred_element_type=f32)
    hfc = jnp.maximum(acc, 0.0)
    # 64 -> 1 projection as a VPU multiply + lane reduction (no M x 1 MXU matmul).
    o_ref[...] = jnp.sum(hfc * fw2_ref[...], axis=-1, keepdims=True) + fb2_ref[...]


# --------------------------------- wrapper --------------------------------- #

@jax.jit
def optimized_cnn_forward(x_nchw, kp):
    if x_nchw.ndim != 4:
        raise ValueError(
            f"Expected 4D input tensor (batch_size, channels, height, width), got shape {x_nchw.shape}")
    n = x_nchw.shape[0]

    # Batch tile: multiple of 16 (keeps every value reshape/slice vreg-aligned, incl. bf16 packing),
    # capped at 64; batch is zero-padded so n_pad % bt == 0 (no bt = n fallback).
    bt = min(64, ((n + 15) // 16) * 16)
    n_pad = ((n + bt - 1) // bt) * bt

    # Lane-dense input layout (only XLA-side data movement, ~raw-input-sized in bf16):
    # NCHW -> NHWC -> zero pad -> flatten each padded row to 54 lanes -> split rows by parity ->
    # reorder to (parity, row-pair, sample, 54) so taps are clean leading-dim ref slices in-kernel.
    x = x_nchw.astype(jnp.float32)
    if n_pad != n:
        x = jnp.pad(x, ((0, n_pad - n), (0, 0), (0, 0), (0, 0)))
    x = jnp.transpose(x, (0, 2, 3, 1))                                  # (n_pad, 16, 16, 3)
    x = jnp.pad(x, ((0, 0), (1, 1), (1, 1), (0, 0)))                    # (n_pad, 18, 18, 3)
    x = x.reshape(n_pad, 18, 54)
    xk = jnp.stack([x[:, 0::2, :], x[:, 1::2, :]], axis=0)              # (2, n_pad, 9, 54)
    xk = jnp.transpose(xk, (0, 2, 1, 3)).astype(jnp.bfloat16)           # (2, 9, n_pad, 54)

    grid = (n_pad // bt,)
    flops = n_pad * 2 * (6 * 8 * 54 * 256 + 6 * 4 * 128 * 256 + 4 * 128 * 64)
    bytes_accessed = (n_pad * (2 * 9 * 54 * 2 + 4)
                      + 2 * (3 * 54 * 256 + 3 * 128 * 256 + 512 * 64)
                      + 4 * (256 + 256 + 64 + 64 + 1))

    out = pl.pallas_call(
        _fused_cnn_kernel,
        out_shape=jax.ShapeDtypeStruct((n_pad, 1), jnp.float32),
        grid=grid,
        in_specs=[
            pl.BlockSpec((2, 9, bt, 54), lambda b: (0, 0, b, 0)),        # input slab (bf16)
            pl.BlockSpec((3, 54, 256), lambda b: (0, 0, 0)),             # conv1 banded weights (bf16)
            pl.BlockSpec((1, 256), lambda b: (0, 0)),                    # conv1 folded bias (tiled)
            pl.BlockSpec((3, 128, 256), lambda b: (0, 0, 0)),            # conv2 banded weights (bf16)
            pl.BlockSpec((1, 256), lambda b: (0, 0)),                    # conv2 folded bias (tiled)
            pl.BlockSpec((512, FC_UNITS), lambda b: (0, 0)),             # fc1 weights (rows permuted)
            pl.BlockSpec((1, FC_UNITS), lambda b: (0, 0)),               # fc1 bias
            pl.BlockSpec((1, FC_UNITS), lambda b: (0, 0)),               # fc2 weight row
            pl.BlockSpec((1, 1), lambda b: (0, 0)),                      # fc2 bias
        ],
        out_specs=pl.BlockSpec((bt, 1), lambda b: (b, 0)),
        compiler_params=pltpu.CompilerParams(
            dimension_semantics=("parallel",),
            vmem_limit_bytes=32 * 1024 * 1024),
        cost_estimate=pl.CostEstimate(flops=flops, transcendentals=0,
                                      bytes_accessed=bytes_accessed),
    )(xk, kp["w1"], kp["b1"], kp["w2"], kp["b2"],
      kp["fw1"], kp["fb1"], kp["fw2"], kp["fb2"])
    return out[:n]


# --------------------------------- parameters --------------------------------- #

def init_raw_params(key):
    """Parameters in PyTorch layouts (Conv2d OIHW, BatchNorm2d stats, Linear (out,in))."""
    raw = {"conv": []}
    for i in range(N_LAYERS):
        cin, cout = CONV_CHANNELS[i], CONV_CHANNELS[i + 1]
        key, kw, kb, kg, kbt, km, kv = jax.random.split(key, 7)
        raw["conv"].append({
            "w": jax.random.normal(kw, (cout, cin, 3, 3), jnp.float32) * (2.0 / (9 * cin)) ** 0.5,
            "b": 0.05 * jax.random.normal(kb, (cout,), jnp.float32),
            "gamma": 1.0 + 0.1 * jax.random.normal(kg, (cout,), jnp.float32),
            "beta": 0.1 * jax.random.normal(kbt, (cout,), jnp.float32),
            "mean": 0.1 * jax.random.normal(km, (cout,), jnp.float32),
            "var": 1.0 + 0.4 * jax.random.uniform(kv, (cout,), jnp.float32),
        })
    flat = CONV_CHANNELS[-1] * (IMG_SIZE >> N_LAYERS) ** 2    # 512, NCHW-flatten order (c, i, j)
    key, k1, k2, k3, k4 = jax.random.split(key, 5)
    raw["fc1_w"] = jax.random.normal(k1, (FC_UNITS, flat), jnp.float32) * (2.0 / flat) ** 0.5
    raw["fc1_b"] = 0.05 * jax.random.normal(k2, (FC_UNITS,), jnp.float32)
    raw["fc2_w"] = jax.random.normal(k3, (1, FC_UNITS), jnp.float32) * (1.0 / FC_UNITS) ** 0.5
    raw["fc2_b"] = 0.05 * jax.random.normal(k4, (1,), jnp.float32)
    return raw


def prepare_kernel_params(raw):
    """Fold BatchNorm and build the block-banded matmul weights (zero runtime cost, numpy-side)."""
    kp = {}

    # ----- conv layer 1: (54 input lanes = padded-row (w_in, c_in)) -> (256 = (w-parity, j, c1)) ---
    L = raw["conv"][0]
    w = np.asarray(L["w"], np.float32)                              # (16, 3, 3, 3) OIHW
    scale = np.asarray(L["gamma"]) / np.sqrt(np.asarray(L["var"]) + BN_EPS)
    w = w * scale[:, None, None, None]
    bias1 = np.asarray(L["beta"]) + scale * (np.asarray(L["b"]) - np.asarray(L["mean"]))
    w1 = np.zeros((3, 54, 256), np.float32)
    for dy in range(3):
        for dx in range(3):
            blk = w[:, :, dy, dx].T                                  # (c_in=3, c_out=16)
            for x in range(16):
                w_in = x + dx                                        # input is pre-padded
                col = (x % 2) * 128 + (x // 2) * 16                  # (w-parity, j, c1) column order
                w1[dy, w_in * 3:(w_in + 1) * 3, col:col + 16] = blk
    kp["w1"] = jnp.asarray(w1).astype(jnp.bfloat16)
    kp["b1"] = jnp.asarray(np.tile(bias1, 16).reshape(1, 256), jnp.float32)

    # ----- conv layer 2: (128 = (j_in, c1)) -> (256 = (w-parity, j2, c2)); padding=1 via zero bands
    L = raw["conv"][1]
    w = np.asarray(L["w"], np.float32)                              # (32, 16, 3, 3)
    scale = np.asarray(L["gamma"]) / np.sqrt(np.asarray(L["var"]) + BN_EPS)
    w = w * scale[:, None, None, None]
    bias2 = np.asarray(L["beta"]) + scale * (np.asarray(L["b"]) - np.asarray(L["mean"]))
    w2 = np.zeros((3, 128, 256), np.float32)
    for dy in range(3):
        for dx in range(3):
            blk = w[:, :, dy, dx].T                                  # (c_in=16, c_out=32)
            for x in range(8):
                j_in = x + dx - 1
                if 0 <= j_in < 8:
                    col = (x % 2) * 128 + (x // 2) * 32
                    w2[dy, j_in * 16:(j_in + 1) * 16, col:col + 32] = blk
    kp["w2"] = jnp.asarray(w2).astype(jnp.bfloat16)
    kp["b2"] = jnp.asarray(np.tile(bias2, 8).reshape(1, 256), jnp.float32)

    # ----- fc1: PyTorch NCHW-flatten rows (c, i, j) -> kernel rows (i-block, j2*32 + c2) ------------
    fw1 = np.asarray(raw["fc1_w"], np.float32).reshape(FC_UNITS, 32, 4, 4)   # (u, c, i, j)
    fw1 = np.transpose(fw1, (2, 3, 1, 0)).reshape(512, FC_UNITS)             # rows (i, j, c)
    kp["fw1"] = jnp.asarray(fw1).astype(jnp.bfloat16)
    kp["fb1"] = jnp.asarray(np.asarray(raw["fc1_b"]).reshape(1, FC_UNITS), jnp.float32)
    kp["fw2"] = jnp.asarray(np.asarray(raw["fc2_w"]).reshape(1, FC_UNITS), jnp.float32)
    kp["fb2"] = jnp.asarray(np.asarray(raw["fc2_b"]).reshape(1, 1), jnp.float32)
    return kp


# ------------------------- pure-JAX reference (PyTorch semantics) ------------------------- #

@jax.jit
def reference_forward(x_nchw, raw):
    x = x_nchw.astype(jnp.float32)
    for L in raw["conv"]:
        x = jax.lax.conv_general_dilated(
            x, L["w"], window_strides=(1, 1), padding=((1, 1), (1, 1)),
            dimension_numbers=("NCHW", "OIHW", "NCHW"),
            precision=jax.lax.Precision.HIGHEST)
        x = x + L["b"][None, :, None, None]
        inv = 1.0 / jnp.sqrt(L["var"] + BN_EPS)
        x = (x - L["mean"][None, :, None, None]) * (L["gamma"] * inv)[None, :, None, None] \
            + L["beta"][None, :, None, None]
        x = jnp.maximum(x, 0.0)                                          # Dropout2d = identity (eval)
        x = jax.lax.reduce_window(x, -jnp.inf, jax.lax.max,
                                  (1, 1, 2, 2), (1, 1, 2, 2), "VALID")
    x = x.reshape(x.shape[0], -1)                                        # PyTorch x.view(N, -1), NCHW
    x = jnp.maximum(x @ raw["fc1_w"].T + raw["fc1_b"], 0.0)              # Dropout = identity (eval)
    return x @ raw["fc2_w"].T + raw["fc2_b"]


# --------------------------------- demo --------------------------------- #

if __name__ == "__main__":
    key = jax.random.PRNGKey(0)
    pkey, xkey = jax.random.split(key)
    raw = init_raw_params(pkey)
    kparams = prepare_kernel_params(raw)

    x = jax.random.normal(xkey, (2, 3, IMG_SIZE, IMG_SIZE), jnp.float32)   # NCHW, like PyTorch
    out = optimized_cnn_forward(x, kparams)
    jax.block_until_ready(out)
    assert out.shape == (2, 1) and out.dtype == jnp.float32

    # Sanity check against a pure-JAX f32 reference of the PyTorch forward (tolerance accounts for
    # bf16 MXU operands / accumulation-order differences of the TPU kernel).
    ref = reference_forward(x, raw)
    ok = bool(jnp.all(jnp.abs(out - ref) <= 1e-1 + 1e-1 * jnp.abs(ref)))
    assert ok, f"kernel/reference mismatch: kernel={out.tolist()} ref={ref.tolist()}"

    print("KERNEL_OK")
</pallas_src>

<mosaic_0001>
module attributes {stable_mosaic.version = 11 : i64} {
  func.func @_fused_cnn_kernel(%arg0: i32, %arg1: memref<2x9x16x54xbf16, #tpu.memory_space<vmem>>, %arg2: memref<3x54x256xbf16, #tpu.memory_space<vmem>>, %arg3: memref<1x256xf32, #tpu.memory_space<vmem>>, %arg4: memref<3x128x256xbf16, #tpu.memory_space<vmem>>, %arg5: memref<1x256xf32, #tpu.memory_space<vmem>>, %arg6: memref<512x64xbf16, #tpu.memory_space<vmem>>, %arg7: memref<1x64xf32, #tpu.memory_space<vmem>>, %arg8: memref<1x64xf32, #tpu.memory_space<vmem>>, %arg9: memref<1x1xf32, #tpu.memory_space<vmem>>, %arg10: memref<16x1xf32, #tpu.memory_space<vmem>>) attributes {dimension_semantics = [#tpu.dimension_semantics<parallel>], iteration_bounds = array<i64: 1>, scalar_prefetch = 0 : i64, scratch_operands = 0 : i64, tpu.core_type = #tpu.core_type<tc>, window_params = [{transform_indices = @transform_0, window_bounds = array<i64: 2, 9, 16, 54>}, {pipeline_mode = #tpu.pipeline_mode<synchronous>, transform_indices = @transform_1, window_bounds = array<i64: 3, 54, 256>}, {pipeline_mode = #tpu.pipeline_mode<synchronous>, transform_indices = @transform_2, window_bounds = array<i64: 1, 256>}, {pipeline_mode = #tpu.pipeline_mode<synchronous>, transform_indices = @transform_3, window_bounds = array<i64: 3, 128, 256>}, {pipeline_mode = #tpu.pipeline_mode<synchronous>, transform_indices = @transform_4, window_bounds = array<i64: 1, 256>}, {pipeline_mode = #tpu.pipeline_mode<synchronous>, transform_indices = @transform_5, window_bounds = array<i64: 512, 64>}, {pipeline_mode = #tpu.pipeline_mode<synchronous>, transform_indices = @transform_6, window_bounds = array<i64: 1, 64>}, {pipeline_mode = #tpu.pipeline_mode<synchronous>, transform_indices = @transform_7, window_bounds = array<i64: 1, 64>}, {pipeline_mode = #tpu.pipeline_mode<synchronous>, transform_indices = @transform_8, window_bounds = array<i64: 1, 1>}, {transform_indices = @transform_9, window_bounds = array<i64: 16, 1>}]} {
    %c0 = arith.constant 0 : index
    %c0_0 = arith.constant 0 : index
    %c0_1 = arith.constant 0 : index
    %c0_2 = arith.constant 0 : index
    %0 = vector.load %arg1[%c0, %c0_0, %c0_1, %c0_2] : memref<2x9x16x54xbf16, #tpu.memory_space<vmem>>, vector<1x8x16x54xbf16>
    %1 = vector.shape_cast %0 : vector<1x8x16x54xbf16> to vector<8x16x54xbf16>
    %2 = vector.shape_cast %1 : vector<8x16x54xbf16> to vector<128x54xbf16>
    %c1 = arith.constant 1 : index
    %c0_3 = arith.constant 0 : index
    %c0_4 = arith.constant 0 : index
    %c0_5 = arith.constant 0 : index
    %3 = vector.load %arg1[%c1, %c0_3, %c0_4, %c0_5] : memref<2x9x16x54xbf16, #tpu.memory_space<vmem>>, vector<1x8x16x54xbf16>
    %4 = vector.shape_cast %3 : vector<1x8x16x54xbf16> to vector<8x16x54xbf16>
    %5 = vector.shape_cast %4 : vector<8x16x54xbf16> to vector<128x54xbf16>
    %c0_6 = arith.constant 0 : index
    %c1_7 = arith.constant 1 : index
    %c0_8 = arith.constant 0 : index
    %c0_9 = arith.constant 0 : index
    %6 = vector.load %arg1[%c0_6, %c1_7, %c0_8, %c0_9] : memref<2x9x16x54xbf16, #tpu.memory_space<vmem>>, vector<1x8x16x54xbf16>
    %7 = vector.shape_cast %6 : vector<1x8x16x54xbf16> to vector<8x16x54xbf16>
    %8 = vector.shape_cast %7 : vector<8x16x54xbf16> to vector<128x54xbf16>
    %c1_10 = arith.constant 1 : index
    %c1_11 = arith.constant 1 : index
    %c0_12 = arith.constant 0 : index
    %c0_13 = arith.constant 0 : index
    %9 = vector.load %arg1[%c1_10, %c1_11, %c0_12, %c0_13] : memref<2x9x16x54xbf16, #tpu.memory_space<vmem>>, vector<1x8x16x54xbf16>
    %10 = vector.shape_cast %9 : vector<1x8x16x54xbf16> to vector<8x16x54xbf16>
    %11 = vector.shape_cast %10 : vector<8x16x54xbf16> to vector<128x54xbf16>
    %c0_14 = arith.constant 0 : index
    %c0_15 = arith.constant 0 : index
    %c0_16 = arith.constant 0 : index
    %12 = vector.load %arg2[%c0_14, %c0_15, %c0_16] : memref<3x54x256xbf16, #tpu.memory_space<vmem>>, vector<1x54x256xbf16>
    %13 = vector.shape_cast %12 : vector<1x54x256xbf16> to vector<54x256xbf16>
    %c1_17 = arith.constant 1 : index
    %c0_18 = arith.constant 0 : index
    %c0_19 = arith.constant 0 : index
    %14 = vector.load %arg2[%c1_17, %c0_18, %c0_19] : memref<3x54x256xbf16, #tpu.memory_space<vmem>>, vector<1x54x256xbf16>
    %15 = vector.shape_cast %14 : vector<1x54x256xbf16> to vector<54x256xbf16>
    %c2 = arith.constant 2 : index
    %c0_20 = arith.constant 0 : index
    %c0_21 = arith.constant 0 : index
    %16 = vector.load %arg2[%c2, %c0_20, %c0_21] : memref<3x54x256xbf16, #tpu.memory_space<vmem>>, vector<1x54x256xbf16>
    %17 = vector.shape_cast %16 : vector<1x54x256xbf16> to vector<54x256xbf16>
    %c0_22 = arith.constant 0 : index
    %c0_23 = arith.constant 0 : index
    %18 = vector.load %arg3[%c0_22, %c0_23] : memref<1x256xf32, #tpu.memory_space<vmem>>, vector<1x256xf32>
    %cst = arith.constant dense<0.000000e+00> : vector<128x256xf32>
    %19 = tpu.matmul %2, %13, %cst {dimension_numbers = #tpu.dot_dimension_numbers<[1], [0], [0], [1], [0, 0, 1, 1], [], []>} : vector<128x54xbf16>, vector<54x256xbf16>, vector<128x256xf32> -> vector<128x256xf32>
    %cst_24 = arith.constant dense<0.000000e+00> : vector<128x256xf32>
    %20 = tpu.matmul %5, %15, %cst_24 {dimension_numbers = #tpu.dot_dimension_numbers<[1], [0], [0], [1], [0, 0, 1, 1], [], []>} : vector<128x54xbf16>, vector<54x256xbf16>, vector<128x256xf32> -> vector<128x256xf32>
    %21 = arith.addf %19, %20 : vector<128x256xf32>
    %cst_25 = arith.constant dense<0.000000e+00> : vector<128x256xf32>
    %22 = tpu.matmul %8, %17, %cst_25 {dimension_numbers = #tpu.dot_dimension_numbers<[1], [0], [0], [1], [0, 0, 1, 1], [], []>} : vector<128x54xbf16>, vector<54x256xbf16>, vector<128x256xf32> -> vector<128x256xf32>
    %23 = arith.addf %21, %22 : vector<128x256xf32>
    %cst_26 = arith.constant dense<0.000000e+00> : vector<128x256xf32>
    %24 = tpu.matmul %5, %13, %cst_26 {dimension_numbers = #tpu.dot_dimension_numbers<[1], [0], [0], [1], [0, 0, 1, 1], [], []>} : vector<128x54xbf16>, vector<54x256xbf16>, vector<128x256xf32> -> vector<128x256xf32>
    %cst_27 = arith.constant dense<0.000000e+00> : vector<128x256xf32>
    %25 = tpu.matmul %8, %15, %cst_27 {dimension_numbers = #tpu.dot_dimension_numbers<[1], [0], [0], [1], [0, 0, 1, 1], [], []>} : vector<128x54xbf16>, vector<54x256xbf16>, vector<128x256xf32> -> vector<128x256xf32>
    %26 = arith.addf %24, %25 : vector<128x256xf32>
    %cst_28 = arith.constant dense<0.000000e+00> : vector<128x256xf32>
    %27 = tpu.matmul %11, %17, %cst_28 {dimension_numbers = #tpu.dot_dimension_numbers<[1], [0], [0], [1], [0, 0, 1, 1], [], []>} : vector<128x54xbf16>, vector<54x256xbf16>, vector<128x256xf32> -> vector<128x256xf32>
    %28 = arith.addf %26, %27 : vector<128x256xf32>
    %29 = vector.broadcast %18 : vector<1x256xf32> to vector<128x256xf32>
    %30 = arith.addf %23, %29 : vector<128x256xf32>
    %cst_29 = arith.constant 0.000000e+00 : f32
    %31 = vector.broadcast %cst_29 : f32 to vector<128x256xf32>
    %32 = arith.maximumf %30, %31 : vector<128x256xf32>
    %33 = vector.broadcast %18 : vector<1x256xf32> to vector<128x256xf32>
    %34 = arith.addf %28, %33 : vector<128x256xf32>
    %cst_30 = arith.constant 0.000000e+00 : f32
    %35 = vector.broadcast %cst_30 : f32 to vector<128x256xf32>
    %36 = arith.maximumf %34, %35 : vector<128x256xf32>
    %37 = arith.maximumf %32, %36 : vector<128x256xf32>
    %38 = vector.extract_strided_slice %37 {offsets = [0, 0], sizes = [128, 128], strides = [1, 1]} : vector<128x256xf32> to vector<128x128xf32>
    %39 = vector.extract_strided_slice %37 {offsets = [0, 128], sizes = [128, 128], strides = [1, 1]} : vector<128x256xf32> to vector<128x128xf32>
    %40 = arith.maximumf %38, %39 : vector<128x128xf32>
    %cst_31 = arith.constant 0.000000e+00 : f32
    %41 = vector.broadcast %cst_31 : f32 to vector<16x128xf32>
    %42 = vector.extract_strided_slice %40 {offsets = [16, 0], sizes = [16, 128], strides = [1, 1]} : vector<128x128xf32> to vector<16x128xf32>
    %43 = vector.extract_strided_slice %40 {offsets = [48, 0], sizes = [16, 128], strides = [1, 1]} : vector<128x128xf32> to vector<16x128xf32>
    %44 = vector.extract_strided_slice %40 {offsets = [80, 0], sizes = [16, 128], strides = [1, 1]} : vector<128x128xf32> to vector<16x128xf32>
    %45 = tpu.concatenate %41, %42, %43, %44 in 0 : vector<16x128xf32>, vector<16x128xf32>, vector<16x128xf32>, vector<16x128xf32> -> vector<64x128xf32>
    %46 = arith.truncf %45 : vector<64x128xf32> to vector<64x128xbf16>
    %47 = vector.extract_strided_slice %40 {offsets = [0, 0], sizes = [16, 128], strides = [1, 1]} : vector<128x128xf32> to vector<16x128xf32>
    %48 = vector.extract_strided_slice %40 {offsets = [32, 0], sizes = [16, 128], strides = [1, 1]} : vector<128x128xf32> to vector<16x128xf32>
    %49 = vector.extract_strided_slice %40 {offsets = [64, 0], sizes = [16, 128], strides = [1, 1]} : vector<128x128xf32> to vector<16x128xf32>
    %50 = vector.extract_strided_slice %40 {offsets = [96, 0], sizes = [16, 128], strides = [1, 1]} : vector<128x128xf32> to vector<16x128xf32>
    %51 = tpu.concatenate %47, %48, %49, %50 in 0 : vector<16x128xf32>, vector<16x128xf32>, vector<16x128xf32>, vector<16x128xf32> -> vector<64x128xf32>
    %52 = arith.truncf %51 : vector<64x128xf32> to vector<64x128xbf16>
    %53 = vector.extract_strided_slice %40 {offsets = [16, 0], sizes = [16, 128], strides = [1, 1]} : vector<128x128xf32> to vector<16x128xf32>
    %54 = vector.extract_strided_slice %40 {offsets = [48, 0], sizes = [16, 128], strides = [1, 1]} : vector<128x128xf32> to vector<16x128xf32>
    %55 = vector.extract_strided_slice %40 {offsets = [80, 0], sizes = [16, 128], strides = [1, 1]} : vector<128x128xf32> to vector<16x128xf32>
    %56 = vector.extract_strided_slice %40 {offsets = [112, 0], sizes = [16, 128], strides = [1, 1]} : vector<128x128xf32> to vector<16x128xf32>
    %57 = tpu.concatenate %53, %54, %55, %56 in 0 : vector<16x128xf32>, vector<16x128xf32>, vector<16x128xf32>, vector<16x128xf32> -> vector<64x128xf32>
    %58 = arith.truncf %57 : vector<64x128xf32> to vector<64x128xbf16>
    %59 = vector.extract_strided_slice %40 {offsets = [32, 0], sizes = [16, 128], strides = [1, 1]} : vector<128x128xf32> to vector<16x128xf32>
    %60 = vector.extract_strided_slice %40 {offsets = [64, 0], sizes = [16, 128], strides = [1, 1]} : vector<128x128xf32> to vector<16x128xf32>
    %61 = vector.extract_strided_slice %40 {offsets = [96, 0], sizes = [16, 128], strides = [1, 1]} : vector<128x128xf32> to vector<16x128xf32>
    %62 = tpu.concatenate %59, %60, %61, %41 in 0 : vector<16x128xf32>, vector<16x128xf32>, vector<16x128xf32>, vector<16x128xf32> -> vector<64x128xf32>
    %63 = arith.truncf %62 : vector<64x128xf32> to vector<64x128xbf16>
    %c0_32 = arith.constant 0 : index
    %c0_33 = arith.constant 0 : index
    %c0_34 = arith.constant 0 : index
    %64 = vector.load %arg4[%c0_32, %c0_33, %c0_34] : memref<3x128x256xbf16, #tpu.memory_space<vmem>>, vector<1x128x256xbf16>
    %65 = vector.shape_cast %64 : vector<1x128x256xbf16> to vector<128x256xbf16>
    %c1_35 = arith.constant 1 : index
    %c0_36 = arith.constant 0 : index
    %c0_37 = arith.constant 0 : index
    %66 = vector.load %arg4[%c1_35, %c0_36, %c0_37] : memref<3x128x256xbf16, #tpu.memory_space<vmem>>, vector<1x128x256xbf16>
    %67 = vector.shape_cast %66 : vector<1x128x256xbf16> to vector<128x256xbf16>
    %c2_38 = arith.constant 2 : index
    %c0_39 = arith.constant 0 : index
    %c0_40 = arith.constant 0 : index
    %68 = vector.load %arg4[%c2_38, %c0_39, %c0_40] : memref<3x128x256xbf16, #tpu.memory_space<vmem>>, vector<1x128x256xbf16>
    %69 = vector.shape_cast %68 : vector<1x128x256xbf16> to vector<128x256xbf16>
    %c0_41 = arith.constant 0 : index
    %c0_42 = arith.constant 0 : index
    %70 = vector.load %arg5[%c0_41, %c0_42] : memref<1x256xf32, #tpu.memory_space<vmem>>, vector<1x256xf32>
    %cst_43 = arith.constant dense<0.000000e+00> : vector<64x256xf32>
    %71 = tpu.matmul %46, %65, %cst_43 {dimension_numbers = #tpu.dot_dimension_numbers<[1], [0], [0], [1], [0, 0, 1, 1], [], []>} : vector<64x128xbf16>, vector<128x256xbf16>, vector<64x256xf32> -> vector<64x256xf32>
    %cst_44 = arith.constant dense<0.000000e+00> : vector<64x256xf32>
    %72 = tpu.matmul %52, %67, %cst_44 {dimension_numbers = #tpu.dot_dimension_numbers<[1], [0], [0], [1], [0, 0, 1, 1], [], []>} : vector<64x128xbf16>, vector<128x256xbf16>, vector<64x256xf32> -> vector<64x256xf32>
    %73 = arith.addf %71, %72 : vector<64x256xf32>
    %cst_45 = arith.constant dense<0.000000e+00> : vector<64x256xf32>
    %74 = tpu.matmul %58, %69, %cst_45 {dimension_numbers = #tpu.dot_dimension_numbers<[1], [0], [0], [1], [0, 0, 1, 1], [], []>} : vector<64x128xbf16>, vector<128x256xbf16>, vector<64x256xf32> -> vector<64x256xf32>
    %75 = arith.addf %73, %74 : vector<64x256xf32>
    %cst_46 = arith.constant dense<0.000000e+00> : vector<64x256xf32>
    %76 = tpu.matmul %52, %65, %cst_46 {dimension_numbers = #tpu.dot_dimension_numbers<[1], [0], [0], [1], [0, 0, 1, 1], [], []>} : vector<64x128xbf16>, vector<128x256xbf16>, vector<64x256xf32> -> vector<64x256xf32>
    %cst_47 = arith.constant dense<0.000000e+00> : vector<64x256xf32>
    %77 = tpu.matmul %58, %67, %cst_47 {dimension_numbers = #tpu.dot_dimension_numbers<[1], [0], [0], [1], [0, 0, 1, 1], [], []>} : vector<64x128xbf16>, vector<128x256xbf16>, vector<64x256xf32> -> vector<64x256xf32>
    %78 = arith.addf %76, %77 : vector<64x256xf32>
    %cst_48 = arith.constant dense<0.000000e+00> : vector<64x256xf32>
    %79 = tpu.matmul %63, %69, %cst_48 {dimension_numbers = #tpu.dot_dimension_numbers<[1], [0], [0], [1], [0, 0, 1, 1], [], []>} : vector<64x128xbf16>, vector<128x256xbf16>, vector<64x256xf32> -> vector<64x256xf32>
    %80 = arith.addf %78, %79 : vector<64x256xf32>
    %81 = vector.broadcast %70 : vector<1x256xf32> to vector<64x256xf32>
    %82 = arith.addf %75, %81 : vector<64x256xf32>
    %cst_49 = arith.constant 0.000000e+00 : f32
    %83 = vector.broadcast %cst_49 : f32 to vector<64x256xf32>
    %84 = arith.maximumf %82, %83 : vector<64x256xf32>
    %85 = vector.broadcast %70 : vector<1x256xf32> to vector<64x256xf32>
    %86 = arith.addf %80, %85 : vector<64x256xf32>
    %cst_50 = arith.constant 0.000000e+00 : f32
    %87 = vector.broadcast %cst_50 : f32 to vector<64x256xf32>
    %88 = arith.maximumf %86, %87 : vector<64x256xf32>
    %89 = arith.maximumf %84, %88 : vector<64x256xf32>
    %90 = vector.extract_strided_slice %89 {offsets = [0, 0], sizes = [64, 128], strides = [1, 1]} : vector<64x256xf32> to vector<64x128xf32>
    %91 = vector.extract_strided_slice %89 {offsets = [0, 128], sizes = [64, 128], strides = [1, 1]} : vector<64x256xf32> to vector<64x128xf32>
    %92 = arith.maximumf %90, %91 : vector<64x128xf32>
    %93 = arith.truncf %92 : vector<64x128xf32> to vector<64x128xbf16>
    %c0_51 = arith.constant 0 : index
    %c0_52 = arith.constant 0 : index
    %94 = vector.load %arg7[%c0_51, %c0_52] : memref<1x64xf32, #tpu.memory_space<vmem>>, vector<1x64xf32>
    %95 = vector.extract_strided_slice %93 {offsets = [0, 0], sizes = [16, 128], strides = [1, 1]} : vector<64x128xbf16> to vector<16x128xbf16>
    %c0_53 = arith.constant 0 : index
    %c0_54 = arith.constant 0 : index
    %96 = vector.load %arg6[%c0_53, %c0_54] : memref<512x64xbf16, #tpu.memory_space<vmem>>, vector<128x64xbf16>
    %cst_55 = arith.constant dense<0.000000e+00> : vector<16x64xf32>
    %97 = tpu.matmul %95, %96, %cst_55 {dimension_numbers = #tpu.dot_dimension_numbers<[1], [0], [0], [1], [0, 0, 1, 1], [], []>} : vector<16x128xbf16>, vector<128x64xbf16>, vector<16x64xf32> -> vector<16x64xf32>
    %98 = vector.broadcast %94 : vector<1x64xf32> to vector<16x64xf32>
    %99 = arith.addf %98, %97 : vector<16x64xf32>
    %100 = vector.extract_strided_slice %93 {offsets = [16, 0], sizes = [16, 128], strides = [1, 1]} : vector<64x128xbf16> to vector<16x128xbf16>
    %c128 = arith.constant 128 : index
    %c0_56 = arith.constant 0 : index
    %101 = vector.load %arg6[%c128, %c0_56] : memref<512x64xbf16, #tpu.memory_space<vmem>>, vector<128x64xbf16>
    %cst_57 = arith.constant dense<0.000000e+00> : vector<16x64xf32>
    %102 = tpu.matmul %100, %101, %cst_57 {dimension_numbers = #tpu.dot_dimension_numbers<[1], [0], [0], [1], [0, 0, 1, 1], [], []>} : vector<16x128xbf16>, vector<128x64xbf16>, vector<16x64xf32> -> vector<16x64xf32>
    %103 = arith.addf %99, %102 : vector<16x64xf32>
    %104 = vector.extract_strided_slice %93 {offsets = [32, 0], sizes = [16, 128], strides = [1, 1]} : vector<64x128xbf16> to vector<16x128xbf16>
    %c256 = arith.constant 256 : index
    %c0_58 = arith.constant 0 : index
    %105 = vector.load %arg6[%c256, %c0_58] : memref<512x64xbf16, #tpu.memory_space<vmem>>, vector<128x64xbf16>
    %cst_59 = arith.constant dense<0.000000e+00> : vector<16x64xf32>
    %106 = tpu.matmul %104, %105, %cst_59 {dimension_numbers = #tpu.dot_dimension_numbers<[1], [0], [0], [1], [0, 0, 1, 1], [], []>} : vector<16x128xbf16>, vector<128x64xbf16>, vector<16x64xf32> -> vector<16x64xf32>
    %107 = arith.addf %103, %106 : vector<16x64xf32>
    %108 = vector.extract_strided_slice %93 {offsets = [48, 0], sizes = [16, 128], strides = [1, 1]} : vector<64x128xbf16> to vector<16x128xbf16>
    %c384 = arith.constant 384 : index
    %c0_60 = arith.constant 0 : index
    %109 = vector.load %arg6[%c384, %c0_60] : memref<512x64xbf16, #tpu.memory_space<vmem>>, vector<128x64xbf16>
    %cst_61 = arith.constant dense<0.000000e+00> : vector<16x64xf32>
    %110 = tpu.matmul %108, %109, %cst_61 {dimension_numbers = #tpu.dot_dimension_numbers<[1], [0], [0], [1], [0, 0, 1, 1], [], []>} : vector<16x128xbf16>, vector<128x64xbf16>, vector<16x64xf32> -> vector<16x64xf32>
    %111 = arith.addf %107, %110 : vector<16x64xf32>
    %cst_62 = arith.constant 0.000000e+00 : f32
    %112 = vector.broadcast %cst_62 : f32 to vector<16x64xf32>
    %113 = arith.maximumf %111, %112 : vector<16x64xf32>
    %c0_63 = arith.constant 0 : index
    %c0_64 = arith.constant 0 : index
    %114 = vector.load %arg8[%c0_63, %c0_64] : memref<1x64xf32, #tpu.memory_space<vmem>>, vector<1x64xf32>
    %115 = vector.broadcast %114 : vector<1x64xf32> to vector<16x64xf32>
    %116 = arith.mulf %113, %115 : vector<16x64xf32>
    %cst_65 = arith.constant dense<0.000000e+00> : vector<16xf32>
    %117 = vector.multi_reduction <add>, %116, %cst_65 [1] : vector<16x64xf32> to vector<16xf32>
    %118 = vector.shape_cast %117 : vector<16xf32> to vector<16x1xf32>
    %c0_66 = arith.constant 0 : index
    %c0_67 = arith.constant 0 : index
    %119 = vector.load %arg9[%c0_66, %c0_67] : memref<1x1xf32, #tpu.memory_space<vmem>>, vector<1x1xf32>
    %120 = vector.broadcast %119 : vector<1x1xf32> to vector<16x1xf32>
    %121 = arith.addf %118, %120 : vector<16x1xf32>
    %c0_68 = arith.constant 0 : index
    %c0_69 = arith.constant 0 : index
    %122 = vector.load %arg10[%c0_68, %c0_69] : memref<16x1xf32, #tpu.memory_space<vmem>>, vector<16x1xf32>
    tpu.vector_store %arg10[%c0_68, %c0_69], %121 {strides = array<i32>} : memref<16x1xf32, #tpu.memory_space<vmem>>, vector<16x1xf32>,
    return
  }
  func.func @transform_0(%arg0: i32) -> (i32, i32, i32, i32) {
    %c0_i32 = arith.constant 0 : i32
    %c0_i32_0 = arith.constant 0 : i32
    %c0_i32_1 = arith.constant 0 : i32
    %c0_i32_2 = arith.constant 0 : i32
    return %c0_i32, %c0_i32_0, %arg0, %c0_i32_1 : i32, i32, i32, i32
  }
  func.func @transform_1(%arg0: i32) -> (i32, i32, i32) {
    %c0_i32 = arith.constant 0 : i32
    %c0_i32_0 = arith.constant 0 : i32
    %c0_i32_1 = arith.constant 0 : i32
    %c0_i32_2 = arith.constant 0 : i32
    return %c0_i32, %c0_i32_0, %c0_i32_1 : i32, i32, i32
  }
  func.func @transform_2(%arg0: i32) -> (i32, i32) {
    %c0_i32 = arith.constant 0 : i32
    %c0_i32_0 = arith.constant 0 : i32
    %c0_i32_1 = arith.constant 0 : i32
    return %c0_i32, %c0_i32_0 : i32, i32
  }
  func.func @transform_3(%arg0: i32) -> (i32, i32, i32) {
    %c0_i32 = arith.constant 0 : i32
    %c0_i32_0 = arith.constant 0 : i32
    %c0_i32_1 = arith.constant 0 : i32
    %c0_i32_2 = arith.constant 0 : i32
    return %c0_i32, %c0_i32_0, %c0_i32_1 : i32, i32, i32
  }
  func.func @transform_4(%arg0: i32) -> (i32, i32) {
    %c0_i32 = arith.constant 0 : i32
    %c0_i32_0 = arith.constant 0 : i32
    %c0_i32_1 = arith.constant 0 : i32
    return %c0_i32, %c0_i32_0 : i32, i32
  }
  func.func @transform_5(%arg0: i32) -> (i32, i32) {
    %c0_i32 = arith.constant 0 : i32
    %c0_i32_0 = arith.constant 0 : i32
    %c0_i32_1 = arith.constant 0 : i32
    return %c0_i32, %c0_i32_0 : i32, i32
  }
  func.func @transform_6(%arg0: i32) -> (i32, i32) {
    %c0_i32 = arith.constant 0 : i32
    %c0_i32_0 = arith.constant 0 : i32
    %c0_i32_1 = arith.constant 0 : i32
    return %c0_i32, %c0_i32_0 : i32, i32
  }
  func.func @transform_7(%arg0: i32) -> (i32, i32) {
    %c0_i32 = arith.constant 0 : i32
    %c0_i32_0 = arith.constant 0 : i32
    %c0_i32_1 = arith.constant 0 : i32
    return %c0_i32, %c0_i32_0 : i32, i32
  }
  func.func @transform_8(%arg0: i32) -> (i32, i32) {
    %c0_i32 = arith.constant 0 : i32
    %c0_i32_0 = arith.constant 0 : i32
    %c0_i32_1 = arith.constant 0 : i32
    return %c0_i32, %c0_i32_0 : i32, i32
  }
  func.func @transform_9(%arg0: i32) -> (i32, i32) {
    %c0_i32 = arith.constant 0 : i32
    %c0_i32_0 = arith.constant 0 : i32
    return %arg0, %c0_i32 : i32, i32
  }
}

</mosaic_0001>

<bundles_post_ra>
// kernel: optimized_cnn_forward.1
= control target key start
LH: loop header
LB: loop body
LE: loop exit
PB: predicated region body
PF: predicated region fallthrough
CT: control target
= control target key end

     0   :  { %vm226_vm0 = vcmask 1042432   ;;  %vm201_vm1 = vcmask 441344   ;;  %vm2477_vm2 = vcmask 523264   ;;  %vm2490_vm3 = vcmask 7168   ;;  %s4924_s1 = inlined_call_operand.vmem [shape: bf16[3,54,256], index: 1, kind: input, shape index: {}]   ;;  %s4925_s0 = inlined_call_operand.vmem [shape: bf16[2,9,16,54], index: 0, kind: input, shape index: {}]   ;;  %s4926_s3 = inlined_call_operand.vmem [shape: bf16[3,128,256], index: 3, kind: input, shape index: {}]   ;;  %s4927_s2 = inlined_call_operand.vmem [shape: f32[1,256], index: 2, kind: input, shape index: {}]   ;;  %s4928_s6 = inlined_call_operand.vmem [shape: f32[1,64], index: 6, kind: input, shape index: {}]   ;;  %s4929_s5 = inlined_call_operand.vmem [shape: bf16[512,64], index: 5, kind: input, shape index: {}]   ;;  %s4930_s4 = inlined_call_operand.vmem [shape: f32[1,256], index: 4, kind: input, shape index: {}]   ;;  %s4931_s7 = inlined_call_operand.vmem [shape: f32[1,64], index: 7, kind: input, shape index: {}]   ;;  %s4932_s8 = inlined_call_operand.<no memory space> [shape: f32[1,1], index: 8, kind: input, shape index: {}]   ;;  %s4933_s9 = inlined_call_operand.vmem [shape: f32[16,1], index: 9, kind: output, shape index: {}]  }
   0x1   :  { %v2551_v0 = vld [vmem:[%s4924_s1 + $0x68] sm:$0x77]  ;;  %v108_v1 = vld [vmem:[%s4924_s1 + $0x30] sm:$0x77]  ;;  %v2609_v6 = vld [vmem:[%s4924_s1 + $0x58] sm:$0xf] }
   0x2   :  { %v185_v2 = vunpack.c.l.b16 %v2551_v0  ;;  %v186_v3 = vunpack.c.h.b16 %v2551_v0  ;;  %v390_v4 = vunpack.c.l.b16 %v108_v1  ;;  %v391_v5 = vunpack.c.h.b16 %v108_v1  ;;  %v3250_v7 = vld [vmem:[%s4924_s1 + $0x5c] sm:$0xf0]  ;;  %v3249_v12 = vld [vmem:[%s4924_s1 + $0x5c] sm:$0xf]  ;;  %v2611_v13 = vld [vmem:[%s4924_s1 + $0x60] sm:$0xf0] }
   0x3   :  { %v2681_v14 = vld [vmem:[%s4924_s1 + $0x20] sm:$0xf]  ;;  %v3244_v15 = vld [vmem:[%s4924_s1 + $0x24] sm:$0xf0]  ;;  %v3243_v16 = vld [vmem:[%s4924_s1 + $0x24] sm:$0xf]  ;;  %v3430_v22 = vor.u32 %v3250_v7, %v2609_v6  ;;  %v3432_v23 = vor.u32 %v3249_v12, %v2611_v13 }
   0x4   :  { %v193_v8 = vpack.c.b16 %v185_v2, %v185_v2  ;;  %v194_v9 = vpack.c.b16 %v186_v3, %v186_v3  ;;  %v398_v10 = vpack.c.b16 %v390_v4, %v390_v4  ;;  %v399_v11 = vpack.c.b16 %v391_v5, %v391_v5  ;;  %v2683_v17 = vld [vmem:[%s4924_s1 + $0x28] sm:$0xf0]  ;;  %v2601_v24 = vld [vmem:[%s4924_s1 + $0x48] sm:$0xf]  ;;  %v3248_v25 = vld [vmem:[%s4924_s1 + $0x4c] sm:$0xf0] }
   0x5   :  { %v3442_v26 = vor.u32 %v3244_v15, %v2681_v14  ;;  %v3444_v27 = vor.u32 %v3243_v16, %v2683_v17  ;;  %v3247_v28 = vld [vmem:[%s4924_s1 + $0x4c] sm:$0xf]  ;;  %v2603_v29 = vld [vmem:[%s4924_s1 + $0x50] sm:$0xf0]  ;;  %v2673_v30 = vld [vmem:[%s4924_s1 + $0x10] sm:$0xf]  ;;  %v2602_v34 = vor.u32 %v3248_v25, %v2601_v24 }
   0x6   :  { %v228_v18 = vsel %vm226_vm0, %v193_v8, 0  ;;  %v231_v19 = vsel %vm226_vm0, %v194_v9, 0  ;;  %v3425_v20 = vsel %vm226_vm0, %v398_v10, 0  ;;  %v3428_v21 = vsel %vm226_vm0, %v399_v11, 0  ;;  %v3242_v31 = vld [vmem:[%s4924_s1 + $0x14] sm:$0xf0] }
   0x7   :  { %237 = vmatpush.bf16.msra.mxu0 %v228_v18  ;;  %286 = vmatpush.bf16.msra.mxu1 %v231_v19  ;;  %v3241_v32 = vld [vmem:[%s4924_s1 + $0x14] sm:$0xf]  ;;  %v2675_v33 = vld [vmem:[%s4924_s1 + $0x18] sm:$0xf0]  ;;  %v2606_v35 = vor.u32 %v3247_v28, %v2603_v29  ;;  %v2593_v36 = vld [vmem:[%s4924_s1 + $0x38] sm:$0xf]  ;;  %v3477_v39 = vor.u32 %v3242_v31, %v2673_v30 }
   0x8   :  { %440 = vmatpush.bf16.msra.mxu2 %v3425_v20  ;;  %489 = vmatpush.bf16.msra.mxu3 %v3428_v21  ;;  %v3246_v37 = vld [vmem:[%s4924_s1 + $0x3c] sm:$0xf0]  ;;  %v3479_v40 = vor.u32 %v3241_v32, %v2675_v33  ;;  %v3245_v41 = vld [vmem:[%s4924_s1 + $0x3c] sm:$0xf]  ;;  %v2595_v42 = vld [vmem:[%s4924_s1 + $0x40] sm:$0xf0] }
   0x9   :  { %v2558_v38 = vld [vmem:[%s4924_s1 + $0xa0] sm:$0x77]  ;;  %v3240_v44 = vld [vmem:[%s4924_s1 + $0x4] sm:$0xf0]  ;;  %v2667_v46 = vld [vmem:[%s4924_s1 + $0x8] sm:$0xf0]  ;;  %v2594_v49 = vor.u32 %v3246_v37, %v2593_v36  ;;  %v2598_v50 = vor.u32 %v3245_v41, %v2595_v42 }
   0xa   :  { %v2665_v43 = vld [vmem:[%s4924_s1] sm:$0xf]  ;;  %v3239_v45 = vld [vmem:[%s4924_s1 + $0x4] sm:$0xf]  ;;  %v593_v47 = vunpack.c.l.b16 %v2558_v38  ;;  %v594_v48 = vunpack.c.h.b16 %v2558_v38  ;;  %v3508_v55 = vld [vmem:[%s4925_s0 + $0x48] sm:$0xff] }
   0xb   :  { %238 = vmatpush.bf16.msra.mxu0 %v3430_v22  ;;  %287 = vmatpush.bf16.msra.mxu1 %v3432_v23  ;;  %v3501_v51 = vor.u32 %v3240_v44, %v2665_v43  ;;  %v3503_v52 = vor.u32 %v3239_v45, %v2667_v46  ;;  %v3207_v56 = vld [vmem:[%s4925_s0] sm:$0xff]  ;;  %v2753_v59 = vld [vmem:[%s4924_s1 + $0x90] sm:$0xf]  ;;  %v3256_v60 = vld [vmem:[%s4924_s1 + $0x94] sm:$0xf0] }
   0xc   :  { %441 = vmatpush.bf16.msra.mxu2 %v3442_v26  ;;  %490 = vmatpush.bf16.msra.mxu3 %v3444_v27  ;;  %v601_v53 = vpack.c.b16 %v593_v47, %v593_v47  ;;  %v602_v54 = vpack.c.b16 %v594_v48, %v594_v48  ;;  %v3255_v61 = vld [vmem:[%s4924_s1 + $0x94] sm:$0xf]  ;;  %v2754_v62 = vor.u32 %v3256_v60, %v2753_v59  ;;  %v2755_v63 = vld [vmem:[%s4924_s1 + $0x98] sm:$0xf0]  ;;  %v3208_v2 = vld [vmem:[%s4925_s0 + $0x8] sm:$0xff] }
   0xd   :  { %v2758_v0 = vor.u32 %v3255_v61, %v2755_v63  ;;  %v3540_v1 = vld [vmem:[%s4925_s0 + $0x50] sm:$0xff]  ;;  %v3554_v3 = vld [vmem:[%s4925_s0 + $0x58] sm:$0xff]  ;;  %v2745_v5 = vld [vmem:[%s4924_s1 + $0x80] sm:$0xf] }
   0xe   :  { %v634_v57 = vsel %vm226_vm0, %v601_v53, 0  ;;  %v637_v58 = vsel %vm226_vm0, %v602_v54, 0  ;;  %v3209_v4 = vld [vmem:[%s4925_s0 + $0x10] sm:$0xff]  ;;  %v3254_v6 = vld [vmem:[%s4924_s1 + $0x84] sm:$0xf0]  ;;  %v3580_v11 = vld [vmem:[%s4925_s0 + $0x60] sm:$0xff] }
   0xf   :  { %239 = vmatpush.bf16.msra.mxu0 %v2602_v34  ;;  %288 = vmatpush.bf16.msra.mxu1 %v2606_v35  ;;  %v3253_v7 = vld [vmem:[%s4924_s1 + $0x84] sm:$0xf]  ;;  %v2746_v8 = vor.u32 %v3254_v6, %v2745_v5  ;;  %v2747_v9 = vld [vmem:[%s4924_s1 + $0x88] sm:$0xf0]  ;;  %v3210_v12 = vld [vmem:[%s4925_s0 + $0x18] sm:$0xff] }
  0x10   :  { %442 = vmatpush.bf16.msra.mxu2 %v3477_v39  ;;  %491 = vmatpush.bf16.msra.mxu3 %v3479_v40  ;;  %v2750_v10 = vor.u32 %v3253_v7, %v2747_v9  ;;  %v3594_v13 = vld [vmem:[%s4925_s0 + $0x68] sm:$0xff]  ;;  %v3211_v14 = vld [vmem:[%s4925_s0 + $0x20] sm:$0xff]  ;;  %v2737_v15 = vld [vmem:[%s4924_s1 + $0x70] sm:$0xf] }
  0x11   :  { %v3252_v16 = vld [vmem:[%s4924_s1 + $0x74] sm:$0xf0]  ;;  %v3251_v17 = vld [vmem:[%s4924_s1 + $0x74] sm:$0xf]  ;;  %v3212_v24 = vld [vmem:[%s4925_s0 + $0x28] sm:$0xff] }
  0x12   :  { %v3656_v25 = vld [vmem:[%s4925_s0 + $0x80] sm:$0xff]  ;;  %v3224_v38 = vld [vmem:[%s4925_s0 + $0x10] sm:$0xff] }
  0x13   :  { %240 = vmatpush.bf16.msra.mxu0 %v2594_v49  ;;  %289 = vmatpush.bf16.msra.mxu1 %v2598_v50 }
  0x14   :  { %443 = vmatpush.bf16.msra.mxu2 %v3501_v51  ;;  %492 = vmatpush.bf16.msra.mxu3 %v3503_v52 }
  0x16   :  { %2615 = vmatmul.msk.bf16.vlgmr.msra.gmra.mxu0 %vm201_vm1, %v3508_v55  ;;  %2623 = vmatmul.msk.bf16.vlgmr.msra.gmra.mxu1 %vm201_vm1, %v3508_v55 }
  0x17   :  { %2687 = vmatmul.msk.bf16.vlgmr.msra.gmra.mxu2 %vm201_vm1, %v3207_v56  ;;  %2695 = vmatmul.msk.bf16.vlgmr.msra.gmra.mxu3 %vm201_vm1, %v3207_v56 }
  0x18   :  { %773 = vmatpush.bf16.msrb.mxu2 %v228_v18  ;;  %822 = vmatpush.bf16.msrb.mxu3 %v231_v19  ;;  %v2738_v18 = vor.u32 %v3252_v16, %v2737_v15  ;;  %v2739_v19 = vld [vmem:[%s4924_s1 + $0x78] sm:$0xf0] }
  0x19   :  { %643 = vmatpush.bf16.msrb.mxu0 %v634_v57  ;;  %692 = vmatpush.bf16.msrb.mxu1 %v637_v58 }
  0x1c   :  { %774 = vmatpush.bf16.msrb.mxu2 %v3430_v22  ;;  %823 = vmatpush.bf16.msrb.mxu3 %v3432_v23  ;;  %v2742_v22 = vor.u32 %v3251_v17, %v2739_v19  ;;  %v3624_v23 = vld [vmem:[%s4925_s0 + $0x70] sm:$0xff] }
  0x1d   :  { %644 = vmatpush.bf16.msrb.mxu0 %v2754_v62  ;;  %693 = vmatpush.bf16.msrb.mxu1 %v2758_v0 }
  0x20   :  { %775 = vmatpush.bf16.msrb.mxu2 %v2602_v34  ;;  %824 = vmatpush.bf16.msrb.mxu3 %v2606_v35 }
  0x21   :  { %645 = vmatpush.bf16.msrb.mxu0 %v2746_v8  ;;  %694 = vmatpush.bf16.msrb.mxu1 %v2750_v10 }
  0x24   :  { %776 = vmatpush.bf16.msrb.mxu2 %v2594_v49  ;;  %825 = vmatpush.bf16.msrb.mxu3 %v2598_v50 }
  0x25   :  { %646 = vmatpush.bf16.msrb.mxu0 %v2738_v18  ;;  %695 = vmatpush.bf16.msrb.mxu1 %v2742_v22 }
  0x26   :  { %2616 = vmatmul.msk.bf16.gmra.mxu0 %vm201_vm1, %v3540_v1  ;;  %2624 = vmatmul.msk.bf16.gmra.mxu1 %vm201_vm1, %v3540_v1 }
  0x27   :  { %2688 = vmatmul.msk.bf16.gmra.mxu2 %vm201_vm1, %v3208_v2  ;;  %2696 = vmatmul.msk.bf16.gmra.mxu3 %vm201_vm1, %v3208_v2  ;;  %v3226_v2 = vld [vmem:[%s4925_s0 + $0x20] sm:$0xff] }
  0x28   :  { %1033 = vmatpush.bf16.msra.mxu2 %v634_v57  ;;  %1082 = vmatpush.bf16.msra.mxu3 %v637_v58 }
  0x29   :  { %871 = vmatpush.bf16.msra.mxu0 %v3425_v20  ;;  %920 = vmatpush.bf16.msra.mxu1 %v3428_v21  ;;  %v3642_v20 = vld [vmem:[%s4925_s0 + $0x78] sm:$0xff]  ;;  %v3213_v21 = vld [vmem:[%s4925_s0 + $0x30] sm:$0xff] }
  0x2c   :  { %1034 = vmatpush.bf16.msra.mxu2 %v2754_v62  ;;  %1083 = vmatpush.bf16.msra.mxu3 %v2758_v0 }
  0x2d   :  { %872 = vmatpush.bf16.msra.mxu0 %v3442_v26  ;;  %921 = vmatpush.bf16.msra.mxu1 %v3444_v27  ;;  %v3214_v26 = vld [vmem:[%s4925_s0 + $0x38] sm:$0xff]  ;;  %v3223_v27 = vld [vmem:[%s4925_s0 + $0x8] sm:$0xff] }
  0x30   :  { %1035 = vmatpush.bf16.msra.mxu2 %v2746_v8  ;;  %1084 = vmatpush.bf16.msra.mxu3 %v2750_v10 }
  0x31   :  { %873 = vmatpush.bf16.msra.mxu0 %v3477_v39  ;;  %922 = vmatpush.bf16.msra.mxu1 %v3479_v40 }
  0x34   :  { %1036 = vmatpush.bf16.msra.mxu2 %v2738_v18  ;;  %1085 = vmatpush.bf16.msra.mxu3 %v2742_v22  ;;  %v3227_v18 = vld [vmem:[%s4925_s0 + $0x28] sm:$0xff] }
  0x35   :  { %874 = vmatpush.bf16.msra.mxu0 %v3501_v51  ;;  %923 = vmatpush.bf16.msra.mxu1 %v3503_v52  ;;  %v3225_v51 = vld [vmem:[%s4925_s0 + $0x18] sm:$0xff] }
  0x36   :  { %2617 = vmatmul.msk.bf16.gmra.mxu0 %vm201_vm1, %v3554_v3  ;;  %2625 = vmatmul.msk.bf16.gmra.mxu1 %vm201_vm1, %v3554_v3 }
  0x37   :  { %2689 = vmatmul.msk.bf16.gmra.mxu2 %vm201_vm1, %v3209_v4  ;;  %2697 = vmatmul.msk.bf16.gmra.mxu3 %vm201_vm1, %v3209_v4 }
  0x46   :  { %2618 = vmatmul.msk.bf16.gmra.mxu0 %vm201_vm1, %v3580_v11  ;;  %2626 = vmatmul.msk.bf16.gmra.mxu1 %vm201_vm1, %v3580_v11 }
  0x47   :  { %2690 = vmatmul.msk.bf16.gmra.mxu2 %vm201_vm1, %v3210_v12  ;;  %2698 = vmatmul.msk.bf16.gmra.mxu3 %vm201_vm1, %v3210_v12 }
  0x56   :  { %2619 = vmatmul.msk.bf16.gmra.mxu0 %vm201_vm1, %v3594_v13  ;;  %2627 = vmatmul.msk.bf16.gmra.mxu1 %vm201_vm1, %v3594_v13 }
  0x57   :  { %2691 = vmatmul.msk.bf16.gmra.mxu2 %vm201_vm1, %v3211_v14  ;;  %2699 = vmatmul.msk.bf16.gmra.mxu3 %vm201_vm1, %v3211_v14 }
  0x66   :  { %2620 = vmatmul.msk.bf16.gmra.mxu0 %vm201_vm1, %v3624_v23  ;;  %2628 = vmatmul.msk.bf16.gmra.mxu1 %vm201_vm1, %v3624_v23 }
  0x67   :  { %2692 = vmatmul.msk.bf16.gmra.mxu2 %vm201_vm1, %v3212_v24  ;;  %2700 = vmatmul.msk.bf16.gmra.mxu3 %vm201_vm1, %v3212_v24 }
  0x76   :  { %2621 = vmatmul.msk.bf16.gmra.mxu0 %vm201_vm1, %v3642_v20  ;;  %2629 = vmatmul.msk.bf16.gmra.mxu1 %vm201_vm1, %v3642_v20 }
  0x77   :  { %2693 = vmatmul.msk.bf16.gmra.mxu2 %vm201_vm1, %v3213_v21  ;;  %2701 = vmatmul.msk.bf16.gmra.mxu3 %vm201_vm1, %v3213_v21 }
  0x86   :  { %2622 = vmatmul.msk.bf16.gmra.mxu0 %vm201_vm1, %v3656_v25  ;;  %2630 = vmatmul.msk.bf16.gmra.mxu1 %vm201_vm1, %v3656_v25 }
  0x87   :  { %2694 = vmatmul.msk.bf16.gmra.mxu2 %vm201_vm1, %v3214_v26  ;;  %2702 = vmatmul.msk.bf16.gmra.mxu3 %vm201_vm1, %v3214_v26 }
  0x93   :  { %v242_v28 = vpop.f32.mrf.mxu0  ;;  %v291_v29 = vpop.f32.mrf.mxu1 }
  0x96   :  { %2759 = vmatmul.msk.bf16.vlgmr.msrb.gmra.mxu0 %vm201_vm1, %v3223_v27  ;;  %2767 = vmatmul.msk.bf16.vlgmr.msrb.gmra.mxu1 %vm201_vm1, %v3223_v27 }
  0x97   :  { %2775 = vmatmul.msk.bf16.vlgmr.msrb.gmra.mxu2 %vm201_vm1, %v3223_v27  ;;  %2783 = vmatmul.msk.bf16.vlgmr.msrb.gmra.mxu3 %vm201_vm1, %v3223_v27 }
  0x9a   :  { %v445_v30 = vpop.f32.mrf.mxu2  ;;  %v494_v31 = vpop.f32.mrf.mxu3 }
  0x9b   :  { %v3674_v32 = vadd.f32 %v445_v30, %v242_v28  ;;  %v3676_v33 = vadd.f32 %v494_v31, %v291_v29  ;;  %v244_v34 = vpop.f32.mrf.mxu0  ;;  %v293_v35 = vpop.f32.mrf.mxu1 }
  0xa2   :  { %v447_v36 = vpop.f32.mrf.mxu2  ;;  %v496_v37 = vpop.f32.mrf.mxu3 }
  0xa3   :  { %v3681_v39 = vadd.f32 %v447_v36, %v244_v34  ;;  %v3683_v40 = vadd.f32 %v496_v37, %v293_v35  ;;  %v247_v41 = vpop.f32.mrf.mxu0  ;;  %v296_v42 = vpop.f32.mrf.mxu1  ;;  %v3228_v36 = vld [vmem:[%s4925_s0 + $0x30] sm:$0xff] }
  0xa6   :  { %2760 = vmatmul.msk.bf16.gmra.mxu0 %vm201_vm1, %v3224_v38  ;;  %2768 = vmatmul.msk.bf16.gmra.mxu1 %vm201_vm1, %v3224_v38 }
  0xa7   :  { %2776 = vmatmul.msk.bf16.gmra.mxu2 %vm201_vm1, %v3224_v38  ;;  %2784 = vmatmul.msk.bf16.gmra.mxu3 %vm201_vm1, %v3224_v38 }
  0xaa   :  { %v450_v43 = vpop.f32.mrf.mxu2  ;;  %v499_v44 = vpop.f32.mrf.mxu3 }
  0xab   :  { %v3689_v45 = vadd.f32 %v450_v43, %v247_v41  ;;  %v3691_v46 = vadd.f32 %v499_v44, %v296_v42  ;;  %v249_v47 = vpop.f32.mrf.mxu0  ;;  %v298_v48 = vpop.f32.mrf.mxu1 }
  0xb2   :  { %v452_v49 = vpop.f32.mrf.mxu2  ;;  %v501_v50 = vpop.f32.mrf.mxu3 }
  0xb3   :  { %v3696_v52 = vadd.f32 %v452_v49, %v249_v47  ;;  %v3698_v53 = vadd.f32 %v501_v50, %v298_v48  ;;  %v252_v54 = vpop.f32.mrf.mxu0  ;;  %v301_v56 = vpop.f32.mrf.mxu1 }
  0xb6   :  { %2761 = vmatmul.msk.bf16.gmra.mxu0 %vm201_vm1, %v3225_v51  ;;  %2769 = vmatmul.msk.bf16.gmra.mxu1 %vm201_vm1, %v3225_v51 }
  0xb7   :  { %2777 = vmatmul.msk.bf16.gmra.mxu2 %vm201_vm1, %v3225_v51  ;;  %2785 = vmatmul.msk.bf16.gmra.mxu3 %vm201_vm1, %v3225_v51 }
  0xba   :  { %v455_v57 = vpop.f32.mrf.mxu2  ;;  %v504_v58 = vpop.f32.mrf.mxu3 }
  0xbb   :  { %v3704_v59 = vadd.f32 %v455_v57, %v252_v54  ;;  %v3706_v60 = vadd.f32 %v504_v58, %v301_v56  ;;  %v254_v61 = vpop.f32.mrf.mxu0  ;;  %v303_v62 = vpop.f32.mrf.mxu1  ;;  %v3229_v56 = vld [vmem:[%s4925_s0 + $0x38] sm:$0xff] }
  0xc2   :  { %v457_v63 = vpop.f32.mrf.mxu2  ;;  %v506_v0 = vpop.f32.mrf.mxu3 }
  0xc3   :  { %v3711_v4 = vadd.f32 %v457_v63, %v254_v61  ;;  %v3713_v5 = vadd.f32 %v506_v0, %v303_v62  ;;  %v257_v6 = vpop.f32.mrf.mxu0  ;;  %v306_v7 = vpop.f32.mrf.mxu1 }
  0xc6   :  { %2762 = vmatmul.msk.bf16.gmra.mxu0 %vm201_vm1, %v3226_v2  ;;  %2770 = vmatmul.msk.bf16.gmra.mxu1 %vm201_vm1, %v3226_v2 }
  0xc7   :  { %2778 = vmatmul.msk.bf16.gmra.mxu2 %vm201_vm1, %v3226_v2  ;;  %2786 = vmatmul.msk.bf16.gmra.mxu3 %vm201_vm1, %v3226_v2 }
  0xca   :  { %v460_v8 = vpop.f32.mrf.mxu2  ;;  %v509_v9 = vpop.f32.mrf.mxu3 }
  0xcb   :  { %v3719_v10 = vadd.f32 %v460_v8, %v257_v6  ;;  %v3721_v12 = vadd.f32 %v509_v9, %v306_v7  ;;  %v259_v14 = vpop.f32.mrf.mxu0  ;;  %v308_v15 = vpop.f32.mrf.mxu1 }
  0xd2   :  { %v462_v16 = vpop.f32.mrf.mxu2  ;;  %v511_v17 = vpop.f32.mrf.mxu3 }
  0xd3   :  { %v3726_v19 = vadd.f32 %v462_v16, %v259_v14  ;;  %v3728_v22 = vadd.f32 %v511_v17, %v308_v15  ;;  %v262_v24 = vpop.f32.mrf.mxu0  ;;  %v311_v21 = vpop.f32.mrf.mxu1  ;;  %v3230_v15 = vld [vmem:[%s4925_s0 + $0x40] sm:$0xff] }
  0xd6   :  { %2763 = vmatmul.msk.bf16.gmra.mxu0 %vm201_vm1, %v3227_v18  ;;  %2771 = vmatmul.msk.bf16.gmra.mxu1 %vm201_vm1, %v3227_v18 }
  0xd7   :  { %2779 = vmatmul.msk.bf16.gmra.mxu2 %vm201_vm1, %v3227_v18  ;;  %2787 = vmatmul.msk.bf16.gmra.mxu3 %vm201_vm1, %v3227_v18 }
  0xda   :  { %v465_v26 = vpop.f32.mrf.mxu2  ;;  %v514_v27 = vpop.f32.mrf.mxu3 }
  0xdb   :  { %v3734_v28 = vadd.f32 %v465_v26, %v262_v24  ;;  %v3736_v29 = vadd.f32 %v514_v27, %v311_v21  ;;  %v264_v30 = vpop.f32.mrf.mxu0  ;;  %v313_v31 = vpop.f32.mrf.mxu1 }
  0xe2   :  { %v467_v34 = vpop.f32.mrf.mxu2  ;;  %v516_v35 = vpop.f32.mrf.mxu3 }
  0xe3   :  { %v3741_v37 = vadd.f32 %v467_v34, %v264_v30  ;;  %v3743_v38 = vadd.f32 %v516_v35, %v313_v31  ;;  %v267_v41 = vpop.f32.mrf.mxu0  ;;  %v316_v42 = vpop.f32.mrf.mxu1 }
  0xe5   :  { %4952 = vst [vmem:[#allocation3_spill] sm:$0xff] %v3743_v38 }
  0xe6   :  { %2764 = vmatmul.msk.bf16.gmra.mxu0 %vm201_vm1, %v3228_v36  ;;  %2772 = vmatmul.msk.bf16.gmra.mxu1 %vm201_vm1, %v3228_v36 }
  0xe7   :  { %2780 = vmatmul.msk.bf16.gmra.mxu2 %vm201_vm1, %v3228_v36  ;;  %2788 = vmatmul.msk.bf16.gmra.mxu3 %vm201_vm1, %v3228_v36 }
  0xea   :  { %v470_v43 = vpop.f32.mrf.mxu2  ;;  %v519_v44 = vpop.f32.mrf.mxu3 }
  0xeb   :  { %v3749_v47 = vadd.f32 %v470_v43, %v267_v41  ;;  %v3751_v48 = vadd.f32 %v519_v44, %v316_v42  ;;  %v269_v49 = vpop.f32.mrf.mxu0  ;;  %v318_v50 = vpop.f32.mrf.mxu1 }
  0xf2   :  { %v472_v51 = vpop.f32.mrf.mxu2  ;;  %v521_v54 = vpop.f32.mrf.mxu3 }
  0xf3   :  { %v3756_v57 = vadd.f32 %v472_v51, %v269_v49  ;;  %v3758_v58 = vadd.f32 %v521_v54, %v318_v50  ;;  %v272_v61 = vpop.f32.mrf.mxu0  ;;  %v321_v62 = vpop.f32.mrf.mxu1  ;;  %v3231_v49 = vld [vmem:[%s4925_s0 + $0x50] sm:$0xff] }
  0xf5   :  { %4953 = vst [vmem:[#allocation4_spill] sm:$0xff] %v3756_v57 }
  0xf6   :  { %4954 = vst [vmem:[#allocation5_spill] sm:$0xff] %v3758_v58  ;;  %2765 = vmatmul.msk.bf16.gmra.mxu0 %vm201_vm1, %v3229_v56  ;;  %2773 = vmatmul.msk.bf16.gmra.mxu1 %vm201_vm1, %v3229_v56 }
  0xf7   :  { %2781 = vmatmul.msk.bf16.gmra.mxu2 %vm201_vm1, %v3229_v56  ;;  %2789 = vmatmul.msk.bf16.gmra.mxu3 %vm201_vm1, %v3229_v56 }
  0xfa   :  { %v475_v63 = vpop.f32.mrf.mxu2  ;;  %v524_v0 = vpop.f32.mrf.mxu3 }
  0xfb   :  { %v3764_v2 = vadd.f32 %v475_v63, %v272_v61  ;;  %v3766_v6 = vadd.f32 %v524_v0, %v321_v62  ;;  %v274_v7 = vpop.f32.mrf.mxu0  ;;  %v323_v8 = vpop.f32.mrf.mxu1 }
 0x102   :  { %v477_v9 = vpop.f32.mrf.mxu2  ;;  %v526_v14 = vpop.f32.mrf.mxu3 }
 0x103   :  { %v3771_v16 = vadd.f32 %v477_v9, %v274_v7  ;;  %v3773_v17 = vadd.f32 %v526_v14, %v323_v8  ;;  %v277_v18 = vpop.f32.mrf.mxu0  ;;  %v326_v24 = vpop.f32.mrf.mxu1  ;;  %v3232_v8 = vld [vmem:[%s4925_s0 + $0x58] sm:$0xff] }
 0x105   :  { %4955 = vst [vmem:[#allocation6_spill] sm:$0xff] %v3771_v16 }
 0x106   :  { %4956 = vst [vmem:[#allocation7_spill] sm:$0xff] %v3773_v17  ;;  %2766 = vmatmul.msk.bf16.gmra.mxu0 %vm201_vm1, %v3230_v15  ;;  %2774 = vmatmul.msk.bf16.gmra.mxu1 %vm201_vm1, %v3230_v15  ;;  %v2929_v17 = vld [vmem:[%s4926_s3 + $0xd0] sm:$0xf] }
 0x107   :  { %2782 = vmatmul.msk.bf16.gmra.mxu2 %vm201_vm1, %v3230_v15  ;;  %2790 = vmatmul.msk.bf16.gmra.mxu3 %vm201_vm1, %v3230_v15 }
 0x10a   :  { %v480_v21 = vpop.f32.mrf.mxu2  ;;  %v529_v26 = vpop.f32.mrf.mxu3 }
 0x10b   :  { %v3779_v27 = vadd.f32 %v480_v21, %v277_v18  ;;  %v3781_v30 = vadd.f32 %v529_v26, %v326_v24  ;;  %v279_v31 = vpop.f32.mrf.mxu0  ;;  %v328_v34 = vpop.f32.mrf.mxu1 }
 0x112   :  { %v482_v35 = vpop.f32.mrf.mxu2  ;;  %v531_v36 = vpop.f32.mrf.mxu3 }
 0x113   :  { %v3783_v41 = vadd.f32 %v482_v35, %v279_v31  ;;  %v3785_v42 = vadd.f32 %v531_v36, %v328_v34  ;;  %v648_v43 = vpop.f32.mrf.mxu0  ;;  %v697_v44 = vpop.f32.mrf.mxu1  ;;  %v3233_v31 = vld [vmem:[%s4925_s0 + $0x60] sm:$0xff] }
 0x114   :  { %v3791_v50 = vadd.f32 %v648_v43, %v3674_v32  ;;  %v3794_v51 = vadd.f32 %v697_v44, %v3676_v33 }
 0x115   :  { %4957 = vst [vmem:[#allocation8_spill] sm:$0xff] %v3783_v41 }
 0x116   :  { %4958 = vst [vmem:[#allocation9_spill] sm:$0xff] %v3785_v42  ;;  %2791 = vmatmul.msk.bf16.vlgmr.msra.gmra.mxu0 %vm201_vm1, %v3508_v55  ;;  %2799 = vmatmul.msk.bf16.vlgmr.msra.gmra.mxu1 %vm201_vm1, %v3508_v55 }
 0x117   :  { %2839 = vmatmul.msk.bf16.vlgmr.msra.gmra.mxu2 %vm201_vm1, %v3231_v49  ;;  %2847 = vmatmul.msk.bf16.vlgmr.msra.gmra.mxu3 %vm201_vm1, %v3231_v49  ;;  %v3011_v49 = vld [vmem:[%s4926_s3 + $0x78] sm:$0xf0] }
 0x11a   :  { %v3802_v54 = vpop.f32.mrf.mxu2  ;;  %v3804_v56 = vpop.f32.mrf.mxu3 }
 0x11b   :  { %v650_v61 = vpop.f32.mrf.mxu0  ;;  %v699_v32 = vpop.f32.mrf.mxu1 }
 0x11c   :  { %v3807_v62 = vadd.f32 %v650_v61, %v3681_v39  ;;  %v3810_v33 = vadd.f32 %v699_v32, %v3683_v40 }
 0x122   :  { %v3812_v63 = vpop.f32.mrf.mxu2  ;;  %v3814_v0 = vpop.f32.mrf.mxu3 }
 0x123   :  { %v653_v55 = vpop.f32.mrf.mxu0  ;;  %v702_v7 = vpop.f32.mrf.mxu1 }
 0x124   :  { %v3820_v9 = vadd.f32 %v653_v55, %v3689_v45  ;;  %v3823_v14 = vadd.f32 %v702_v7, %v3691_v46  ;;  %v2945_v7 = vld [vmem:[%s4926_s3 + $0xf0] sm:$0xf] }
 0x126   :  { %2792 = vmatmul.msk.bf16.gmra.mxu0 %vm201_vm1, %v3540_v1  ;;  %2800 = vmatmul.msk.bf16.gmra.mxu1 %vm201_vm1, %v3540_v1 }
 0x127   :  { %2840 = vmatmul.msk.bf16.gmra.mxu2 %vm201_vm1, %v3232_v8  ;;  %2848 = vmatmul.msk.bf16.gmra.mxu3 %vm201_vm1, %v3232_v8  ;;  %v3288_v8 = vld [vmem:[%s4926_s3 + $0xf4] sm:$0xf0] }
 0x12a   :  { %v3831_v39 = vpop.f32.mrf.mxu2  ;;  %v3833_v40 = vpop.f32.mrf.mxu3 }
 0x12b   :  { %v655_v15 = vpop.f32.mrf.mxu0  ;;  %v704_v45 = vpop.f32.mrf.mxu1 }
 0x12c   :  { %v3836_v18 = vadd.f32 %v655_v15, %v3696_v52  ;;  %v3839_v46 = vadd.f32 %v704_v45, %v3698_v53  ;;  %v3894_v15 = vor.u32 %v3288_v8, %v2945_v7 }
 0x12e   :  { %1480 = vmatpush.bf16.msrb.mxu0 %v3894_v15 }
 0x132   :  { %v3841_v24 = vpop.f32.mrf.mxu2  ;;  %v3843_v21 = vpop.f32.mrf.mxu3 }
 0x133   :  { %v658_v1 = vpop.f32.mrf.mxu0  ;;  %v707_v26 = vpop.f32.mrf.mxu1 }
 0x134   :  { %v3849_v34 = vadd.f32 %v658_v1, %v3704_v59  ;;  %v3852_v35 = vadd.f32 %v707_v26, %v3706_v60  ;;  %v3009_v59 = vld [vmem:[%s4926_s3 + $0x70] sm:$0xf]  ;;  %v3272_v60 = vld [vmem:[%s4926_s3 + $0x74] sm:$0xf0] }
 0x135   :  { %v3873_v44 = vor.u32 %v3272_v60, %v3009_v59  ;;  %v3234_v60 = vld [vmem:[%s4925_s0 + $0x68] sm:$0xff] }
 0x136   :  { %2793 = vmatmul.msk.bf16.gmra.mxu0 %vm201_vm1, %v3554_v3  ;;  %2801 = vmatmul.msk.bf16.gmra.mxu1 %vm201_vm1, %v3554_v3  ;;  %v3271_v3 = vld [vmem:[%s4926_s3 + $0x74] sm:$0xf] }
 0x137   :  { %2841 = vmatmul.msk.bf16.gmra.mxu2 %vm201_vm1, %v3233_v31  ;;  %2849 = vmatmul.msk.bf16.gmra.mxu3 %vm201_vm1, %v3233_v31  ;;  %4959 = vst [vmem:[#allocation10_spill] sm:$0xff] %v3873_v44  ;;  %v3884_v55 = vor.u32 %v3271_v3, %v3011_v49 }
 0x138   :  { %1618 = vmatpush.bf16.msrb.mxu2 %v3873_v44  ;;  %v3284_v44 = vld [vmem:[%s4926_s3 + $0xd4] sm:$0xf0] }
 0x139   :  { %4960 = vst [vmem:[#allocation11_spill] sm:$0xff] %v3884_v55  ;;  %1647 = vmatpush.bf16.msrb.mxu3 %v3884_v55 }
 0x13a   :  { %v3860_v52 = vpop.f32.mrf.mxu2  ;;  %v3862_v53 = vpop.f32.mrf.mxu3 }
 0x13b   :  { %v660_v36 = vpop.f32.mrf.mxu0  ;;  %v709_v43 = vpop.f32.mrf.mxu1 }
 0x13c   :  { %v3879_v61 = vadd.f32 %v660_v36, %v3711_v4  ;;  %v3882_v32 = vadd.f32 %v709_v43, %v3713_v5  ;;  %v3287_v4 = vld [vmem:[%s4926_s3 + $0xf4] sm:$0xf]  ;;  %v2947_v5 = vld [vmem:[%s4926_s3 + $0xf8] sm:$0xf0] }
 0x13d   :  { %v3906_v26 = vor.u32 %v3287_v4, %v2947_v5  ;;  %v3003_v5 = vld [vmem:[%s4926_s3 + $0x68] sm:$0xf0] }
 0x13f   :  { %1509 = vmatpush.bf16.msrb.mxu1 %v3906_v26 }
 0x142   :  { %v3902_v45 = vpop.f32.mrf.mxu2  ;;  %v3904_v1 = vpop.f32.mrf.mxu3 }
 0x143   :  { %v663_v31 = vpop.f32.mrf.mxu0  ;;  %v712_v59 = vpop.f32.mrf.mxu1 }
 0x144   :  { %v3913_v3 = vadd.f32 %v663_v31, %v3719_v10  ;;  %v3916_v36 = vadd.f32 %v712_v59, %v3721_v12  ;;  %v3001_v10 = vld [vmem:[%s4926_s3 + $0x60] sm:$0xf]  ;;  %v3270_v12 = vld [vmem:[%s4926_s3 + $0x64] sm:$0xf0] }
 0x145   :  { %v3938_v4 = vor.u32 %v3270_v12, %v3001_v10  ;;  %v2937_v10 = vld [vmem:[%s4926_s3 + $0xe0] sm:$0xf]  ;;  %v3286_v12 = vld [vmem:[%s4926_s3 + $0xe4] sm:$0xf0] }
 0x146   :  { %2794 = vmatmul.msk.bf16.gmra.mxu0 %vm201_vm1, %v3580_v11  ;;  %2802 = vmatmul.msk.bf16.gmra.mxu1 %vm201_vm1, %v3580_v11  ;;  %v3269_v11 = vld [vmem:[%s4926_s3 + $0x64] sm:$0xf]  ;;  %v3959_v42 = vor.u32 %v3286_v12, %v2937_v10  ;;  %v3235_v10 = vld [vmem:[%s4925_s0 + $0x70] sm:$0xff] }
 0x147   :  { %2842 = vmatmul.msk.bf16.gmra.mxu2 %vm201_vm1, %v3234_v60  ;;  %2850 = vmatmul.msk.bf16.gmra.mxu3 %vm201_vm1, %v3234_v60  ;;  %4961 = vst [vmem:[#allocation12_spill] sm:$0xff] %v3938_v4  ;;  %v3949_v60 = vor.u32 %v3269_v11, %v3003_v5 }
 0x148   :  { %1619 = vmatpush.bf16.msrb.mxu2 %v3938_v4  ;;  %1481 = vmatpush.bf16.msrb.mxu0 %v3959_v42  ;;  %v2995_v4 = vld [vmem:[%s4926_s3 + $0x58] sm:$0xf0] }
 0x149   :  { %4962 = vst [vmem:[#allocation13_spill] sm:$0xff] %v3949_v60  ;;  %1648 = vmatpush.bf16.msrb.mxu3 %v3949_v60 }
 0x14a   :  { %v3925_v43 = vpop.f32.mrf.mxu2  ;;  %v3927_v49 = vpop.f32.mrf.mxu3 }
 0x14b   :  { %v665_v7 = vpop.f32.mrf.mxu0  ;;  %v714_v8 = vpop.f32.mrf.mxu1 }
 0x14c   :  { %v3944_v31 = vadd.f32 %v665_v7, %v3726_v19  ;;  %v3947_v59 = vadd.f32 %v714_v8, %v3728_v22  ;;  %v3285_v19 = vld [vmem:[%s4926_s3 + $0xe4] sm:$0xf]  ;;  %v2939_v22 = vld [vmem:[%s4926_s3 + $0xe8] sm:$0xf0] }
 0x14d   :  { %v3971_v8 = vor.u32 %v3285_v19, %v2939_v22 }
 0x14f   :  { %1510 = vmatpush.bf16.msrb.mxu1 %v3971_v8 }
 0x152   :  { %v3967_v11 = vpop.f32.mrf.mxu2  ;;  %v3969_v7 = vpop.f32.mrf.mxu3 }
 0x153   :  { %v668_v5 = vpop.f32.mrf.mxu0  ;;  %v717_v41 = vpop.f32.mrf.mxu1 }
 0x154   :  { %v3978_v12 = vadd.f32 %v668_v5, %v3734_v28  ;;  %v3981_v60 = vadd.f32 %v717_v41, %v3736_v29  ;;  %v2993_v28 = vld [vmem:[%s4926_s3 + $0x50] sm:$0xf]  ;;  %v3268_v29 = vld [vmem:[%s4926_s3 + $0x54] sm:$0xf0] }
 0x156   :  { %2795 = vmatmul.msk.bf16.gmra.mxu0 %vm201_vm1, %v3594_v13  ;;  %2803 = vmatmul.msk.bf16.gmra.mxu1 %vm201_vm1, %v3594_v13  ;;  %v3267_v13 = vld [vmem:[%s4926_s3 + $0x54] sm:$0xf] }
 0x157   :  { %2843 = vmatmul.msk.bf16.gmra.mxu2 %vm201_vm1, %v3235_v10  ;;  %2851 = vmatmul.msk.bf16.gmra.mxu3 %vm201_vm1, %v3235_v10  ;;  %v4007_v10 = vor.u32 %v3268_v29, %v2993_v28  ;;  %v4012_v55 = vor.u32 %v3267_v13, %v2995_v4  ;;  %v4022_v28 = vor.u32 %v3284_v44, %v2929_v17  ;;  %v3283_v29 = vld [vmem:[%s4926_s3 + $0xd4] sm:$0xf]  ;;  %v2931_v4 = vld [vmem:[%s4926_s3 + $0xd8] sm:$0xf0] }
 0x158   :  { %v3236_v17 = vld [vmem:[%s4925_s0 + $0x78] sm:$0xff] }
 0x159   :  { %4964 = vst [vmem:[#allocation15_spill] sm:$0xff] %v4007_v10  ;;  %1620 = vmatpush.bf16.msrb.mxu2 %v4007_v10  ;;  %1649 = vmatpush.bf16.msrb.mxu3 %v4012_v55  ;;  %v4034_v10 = vor.u32 %v3283_v29, %v2931_v4 }
 0x15a   :  { %v3990_v19 = vpop.f32.mrf.mxu2  ;;  %v3992_v22 = vpop.f32.mrf.mxu3  ;;  %4965 = vst [vmem:[#allocation16_spill] sm:$0xff] %v4012_v55  ;;  %1482 = vmatpush.bf16.msrb.mxu0 %v4022_v28 }
 0x15b   :  { %v4003_v41 = vpop.f32.mrf.mxu0  ;;  %v4005_v5 = vpop.f32.mrf.mxu1  ;;  %1511 = vmatpush.bf16.msrb.mxu1 %v4034_v10 }
 0x15c   :  { %4963 = vst [vmem:[#allocation14_spill] sm:$0xff] %v4005_v5 }
 0x162   :  { %v4030_v13 = vpop.f32.mrf.mxu2  ;;  %v4032_v55 = vpop.f32.mrf.mxu3 }
 0x163   :  { %4966 = vst [vmem:[#allocation17_spill] sm:$0xff] %v4030_v13  ;;  %v673_v16 = vpop.f32.mrf.mxu0  ;;  %v722_v58 = vpop.f32.mrf.mxu1 }
 0x164   :  { %4967 = vst [vmem:[#allocation18_spill] sm:$0xff] %v4032_v55  ;;  %v4041_v44 = vadd.f32 %v673_v16, %v3749_v47  ;;  %v4044_v57 = vadd.f32 %v722_v58, %v3751_v48  ;;  %v2985_v47 = vld [vmem:[%s4926_s3 + $0x40] sm:$0xf]  ;;  %v3266_v48 = vld [vmem:[%s4926_s3 + $0x44] sm:$0xf0] }
 0x166   :  { %4968 = vst [vmem:[#allocation19_spill] sm:$0xff] %v4041_v44  ;;  %2796 = vmatmul.msk.bf16.gmra.mxu0 %vm201_vm1, %v3624_v23  ;;  %2804 = vmatmul.msk.bf16.gmra.mxu1 %vm201_vm1, %v3624_v23  ;;  %v3265_v23 = vld [vmem:[%s4926_s3 + $0x44] sm:$0xf] }
 0x167   :  { %4969 = vst [vmem:[#allocation20_spill] sm:$0xff] %v4044_v57  ;;  %2844 = vmatmul.msk.bf16.gmra.mxu2 %vm201_vm1, %v3236_v17  ;;  %2852 = vmatmul.msk.bf16.gmra.mxu3 %vm201_vm1, %v3236_v17  ;;  %v4070_v17 = vor.u32 %v3266_v48, %v2985_v47  ;;  %v2987_v57 = vld [vmem:[%s4926_s3 + $0x48] sm:$0xf0]  ;;  %v3281_v48 = vld [vmem:[%s4926_s3 + $0xc4] sm:$0xf] }
 0x168   :  { %v4075_v44 = vor.u32 %v3265_v23, %v2987_v57  ;;  %v2923_v57 = vld [vmem:[%s4926_s3 + $0xc8] sm:$0xf0] }
 0x169   :  { %4974 = vst [vmem:[#allocation25_spill] sm:$0xff] %v4070_v17  ;;  %1621 = vmatpush.bf16.msrb.mxu2 %v4070_v17  ;;  %v4097_v17 = vor.u32 %v3281_v48, %v2923_v57 }
 0x16a   :  { %v4053_v29 = vpop.f32.mrf.mxu2  ;;  %v4055_v4 = vpop.f32.mrf.mxu3  ;;  %4975 = vst [vmem:[#allocation26_spill] sm:$0xff] %v4075_v44  ;;  %1650 = vmatpush.bf16.msrb.mxu3 %v4075_v44 }
 0x16b   :  { %4970 = vst [vmem:[#allocation21_spill] sm:$0xff] %v4053_v29  ;;  %v4066_v58 = vpop.f32.mrf.mxu0  ;;  %v4068_v16 = vpop.f32.mrf.mxu1  ;;  %1512 = vmatpush.bf16.msrb.mxu1 %v4097_v17 }
 0x16c   :  { %4971 = vst [vmem:[#allocation22_spill] sm:$0xff] %v4055_v4  ;;  %v2921_v4 = vld [vmem:[%s4926_s3 + $0xc0] sm:$0xf] }
 0x16d   :  { %4972 = vst [vmem:[#allocation23_spill] sm:$0xff] %v4066_v58 }
 0x16e   :  { %4973 = vst [vmem:[#allocation24_spill] sm:$0xff] %v4068_v16  ;;  %v3282_v16 = vld [vmem:[%s4926_s3 + $0xc4] sm:$0xf0] }
 0x16f   :  { %v4085_v47 = vor.u32 %v3282_v16, %v2921_v4  ;;  %v3237_v4 = vld [vmem:[%s4925_s0 + $0x80] sm:$0xff] }
 0x171   :  { %1483 = vmatpush.bf16.msrb.mxu0 %v4085_v47 }
 0x172   :  { %v4093_v23 = vpop.f32.mrf.mxu2  ;;  %v4095_v44 = vpop.f32.mrf.mxu3 }
 0x173   :  { %4976 = vst [vmem:[#allocation27_spill] sm:$0xff] %v4093_v23  ;;  %v678_v58 = vpop.f32.mrf.mxu0  ;;  %v727_v29 = vpop.f32.mrf.mxu1  ;;  %v2907_v23 = vld [vmem:[%s4926_s3 + $0xa8] sm:$0xf0] }
 0x174   :  { %4977 = vst [vmem:[#allocation28_spill] sm:$0xff] %v4095_v44  ;;  %v4104_v16 = vadd.f32 %v678_v58, %v3764_v2  ;;  %v4107_v55 = vadd.f32 %v727_v29, %v3766_v6  ;;  %v2977_v2 = vld [vmem:[%s4926_s3 + $0x30] sm:$0xf]  ;;  %v3264_v6 = vld [vmem:[%s4926_s3 + $0x34] sm:$0xf0] }
 0x175   :  { %v3263_v29 = vld [vmem:[%s4926_s3 + $0x34] sm:$0xf]  ;;  %v4125_v58 = vor.u32 %v3264_v6, %v2977_v2  ;;  %v2969_v2 = vld [vmem:[%s4926_s3 + $0x20] sm:$0xf]  ;;  %v3262_v6 = vld [vmem:[%s4926_s3 + $0x24] sm:$0xf0] }
 0x176   :  { %4978 = vst [vmem:[#allocation29_spill] sm:$0xff] %v4104_v16  ;;  %2797 = vmatmul.msk.bf16.gmra.mxu0 %vm201_vm1, %v3642_v20  ;;  %2805 = vmatmul.msk.bf16.gmra.mxu1 %vm201_vm1, %v3642_v20  ;;  %v2979_v20 = vld [vmem:[%s4926_s3 + $0x38] sm:$0xf0] }
 0x177   :  { %4979 = vst [vmem:[#allocation30_spill] sm:$0xff] %v4107_v55  ;;  %2845 = vmatmul.msk.bf16.gmra.mxu2 %vm201_vm1, %v3237_v4  ;;  %2853 = vmatmul.msk.bf16.gmra.mxu3 %vm201_vm1, %v3237_v4  ;;  %v4130_v48 = vor.u32 %v3263_v29, %v2979_v20  ;;  %v3261_v29 = vld [vmem:[%s4926_s3 + $0x24] sm:$0xf]  ;;  %v4151_v20 = vor.u32 %v3262_v6, %v2969_v2 }
 0x178   :  { %4980 = vst [vmem:[#allocation31_spill] sm:$0xff] %v4125_v58  ;;  %1622 = vmatpush.bf16.msrb.mxu2 %v4125_v58  ;;  %v2971_v58 = vld [vmem:[%s4926_s3 + $0x28] sm:$0xf0] }
 0x179   :  { %4981 = vst [vmem:[#allocation32_spill] sm:$0xff] %v4130_v48  ;;  %1651 = vmatpush.bf16.msrb.mxu3 %v4130_v48  ;;  %v2913_v48 = vld [vmem:[%s4926_s3 + $0xb0] sm:$0xf] }
 0x17a   :  { %v4132_v57 = vpop.f32.mrf.mxu2  ;;  %v4134_v4 = vpop.f32.mrf.mxu3  ;;  %4986 = vst [vmem:[#allocation37_spill] sm:$0xff] %v4151_v20 }
 0x17b   :  { %4982 = vst [vmem:[#allocation33_spill] sm:$0xff] %v4132_v57  ;;  %v4137_v55 = vpop.f32.mrf.mxu0  ;;  %v4139_v16 = vpop.f32.mrf.mxu1  ;;  %v3260_v57 = vld [vmem:[%s4926_s3 + $0x14] sm:$0xf0] }
 0x17c   :  { %4983 = vst [vmem:[#allocation34_spill] sm:$0xff] %v4134_v4  ;;  %v3279_v4 = vld [vmem:[%s4926_s3 + $0xb4] sm:$0xf]  ;;  %1623 = vmatpush.bf16.msrb.mxu2 %v4151_v20  ;;  %v3278_v20 = vld [vmem:[%s4926_s3 + $0xa4] sm:$0xf0] }
 0x17d   :  { %4984 = vst [vmem:[#allocation35_spill] sm:$0xff] %v4137_v55  ;;  %v3280_v55 = vld [vmem:[%s4926_s3 + $0xb4] sm:$0xf0] }
 0x17e   :  { %4985 = vst [vmem:[#allocation36_spill] sm:$0xff] %v4139_v16  ;;  %v4156_v16 = vor.u32 %v3261_v29, %v2971_v58  ;;  %v4168_v2 = vor.u32 %v3280_v55, %v2913_v48  ;;  %v2915_v58 = vld [vmem:[%s4926_s3 + $0xb8] sm:$0xf0]  ;;  %v2961_v29 = vld [vmem:[%s4926_s3 + $0x10] sm:$0xf] }
 0x17f   :  { %v4174_v6 = vor.u32 %v3279_v4, %v2915_v58  ;;  %v3259_v55 = vld [vmem:[%s4926_s3 + $0x14] sm:$0xf]  ;;  %v4186_v48 = vor.u32 %v3260_v57, %v2961_v29  ;;  %v2963_v4 = vld [vmem:[%s4926_s3 + $0x18] sm:$0xf0]  ;;  %v3277_v57 = vld [vmem:[%s4926_s3 + $0xa4] sm:$0xf] }
 0x180   :  { %4987 = vst [vmem:[#allocation38_spill] sm:$0xff] %v4156_v16  ;;  %1652 = vmatpush.bf16.msrb.mxu3 %v4156_v16  ;;  %1484 = vmatpush.bf16.msrb.mxu0 %v4168_v2  ;;  %v4192_v58 = vor.u32 %v3259_v55, %v2963_v4  ;;  %v2905_v16 = vld [vmem:[%s4926_s3 + $0xa0] sm:$0xf]  ;;  %v3238_v55 = vld [vmem:[%s4925_s0 + $0x88] sm:$0xff]  ;;  %v4217_v38 = vor.u32 %v3277_v57, %v2907_v23 }
 0x181   :  { %4988 = vst [vmem:[#allocation39_spill] sm:$0xff] %v4186_v48  ;;  %1513 = vmatpush.bf16.msrb.mxu1 %v4174_v6  ;;  %1624 = vmatpush.bf16.msrb.mxu2 %v4186_v48  ;;  %v4211_v4 = vor.u32 %v3278_v20, %v2905_v16  ;;  %v3258_v48 = vld [vmem:[%s4926_s3 + $0x4] sm:$0xf0]  ;;  %v3257_v16 = vld [vmem:[%s4926_s3 + $0x4] sm:$0xf] }
 0x182   :  { %4989 = vst [vmem:[#allocation40_spill] sm:$0xff] %v4192_v58  ;;  %v4203_v29 = vpop.f32.mrf.mxu2  ;;  %v4205_v44 = vpop.f32.mrf.mxu3  ;;  %v2955_v57 = vld [vmem:[%s4926_s3 + $0x8] sm:$0xf0] }
 0x183   :  { %4990 = vst [vmem:[#allocation41_spill] sm:$0xff] %v4203_v29  ;;  %v683_v13 = vpop.f32.mrf.mxu0  ;;  %v732_v5 = vpop.f32.mrf.mxu1 }
 0x184   :  { %4991 = vst [vmem:[#allocation42_spill] sm:$0xff] %v4205_v44  ;;  %1653 = vmatpush.bf16.msrb.mxu3 %v4192_v58  ;;  %v2953_v44 = vld [vmem:[%s4926_s3] sm:$0xf]  ;;  %v4229_v20 = vadd.f32 %v683_v13, %v3779_v27  ;;  %v4232_v29 = vadd.f32 %v732_v5, %v3781_v30  ;;  %1485 = vmatpush.bf16.msrb.mxu0 %v4211_v4  ;;  %v2897_v27 = vld [vmem:[%s4926_s3 + $0x90] sm:$0xf] }
 0x185   :  { %v4235_v23 = vor.u32 %v3258_v48, %v2953_v44  ;;  %1514 = vmatpush.bf16.msrb.mxu1 %v4217_v38  ;;  %v4241_v58 = vor.u32 %v3257_v16, %v2955_v57  ;;  %v3276_v30 = vld [vmem:[%s4926_s3 + $0x94] sm:$0xf0]  ;;  %v3275_v5 = vld [vmem:[%s4926_s3 + $0x94] sm:$0xf]  ;;  %v2899_v44 = vld [vmem:[%s4926_s3 + $0x98] sm:$0xf0] }
 0x186   :  { %4992 = vst [vmem:[#allocation43_spill] sm:$0xff] %v4232_v29  ;;  %2798 = vmatmul.msk.bf16.gmra.mxu0 %vm201_vm1, %v3656_v25  ;;  %2806 = vmatmul.msk.bf16.gmra.mxu1 %vm201_vm1, %v3656_v25  ;;  %v4256_v13 = vor.u32 %v3276_v30, %v2897_v27  ;;  %v4263_v48 = vor.u32 %v3275_v5, %v2899_v44  ;;  %v2889_v25 = vld [vmem:[%s4926_s3 + $0x80] sm:$0xf]  ;;  %v3274_v16 = vld [vmem:[%s4926_s3 + $0x84] sm:$0xf0] }
 0x187   :  { %4993 = vst [vmem:[#allocation44_spill] sm:$0xff] %v4235_v23  ;;  %2846 = vmatmul.msk.bf16.gmra.mxu2 %vm201_vm1, %v3238_v55  ;;  %2854 = vmatmul.msk.bf16.gmra.mxu3 %vm201_vm1, %v3238_v55  ;;  %v3273_v55 = vld [vmem:[%s4926_s3 + $0x84] sm:$0xf]  ;;  %v4282_v30 = vor.u32 %v3274_v16, %v2889_v25  ;;  %v2891_v5 = vld [vmem:[%s4926_s3 + $0x88] sm:$0xf0] }
 0x188   :  { %4994 = vst [vmem:[#allocation45_spill] sm:$0xff] %v4241_v58  ;;  %1625 = vmatpush.bf16.msrb.mxu2 %v4235_v23  ;;  %1654 = vmatpush.bf16.msrb.mxu3 %v4241_v58  ;;  %v2894_v23 = vor.u32 %v3273_v55, %v2891_v5  ;;  %v125_v55 = vld [vmem:[%s4927_s2] sm:$0x3]  ;;  %v4950_v5 = vmov 0.0|0.0  }
 0x189   :  { %1486 = vmatpush.bf16.msrb.mxu0 %v4256_v13  ;;  %1515 = vmatpush.bf16.msrb.mxu1 %v4263_v48 }
 0x18a   :  { %v4278_v57 = vpop.f32.mrf.mxu2  ;;  %v4280_v27 = vpop.f32.mrf.mxu3 }
 0x18b   :  { %v4289_v44 = vpop.f32.mrf.mxu0  ;;  %v4291_v58 = vpop.f32.mrf.mxu1 }
 0x18c   :  { %1830 = vmatpush.bf16.msra.mxu2 %v3894_v15  ;;  %1859 = vmatpush.bf16.msra.mxu3 %v3906_v26  ;;  %4995 = vst [vmem:[#allocation46_spill] sm:$0xff] %v4289_v44 }
 0x18d   :  { %4996 = vst [vmem:[#allocation47_spill] sm:$0xff] %v4291_v58  ;;  %1487 = vmatpush.bf16.msrb.mxu0 %v4282_v30  ;;  %1516 = vmatpush.bf16.msrb.mxu1 %v2894_v23 }
 0x190   :  { %1831 = vmatpush.bf16.msra.mxu2 %v3959_v42  ;;  %1860 = vmatpush.bf16.msra.mxu3 %v3971_v8  ;;  %v4307_v42 = vperm.slane %v125_v55, 0  ;;  %v4309_v8 = vperm.slane %v125_v55, 1 }
 0x192   :  { %v4296_v25 = vpop.f32.mrf.mxu2  ;;  %v4298_v16 = vpop.f32.mrf.mxu3 }
 0x193   :  { %4997 = vst [vmem:[#allocation48_spill] sm:$0xff] %v4296_v25  ;;  %v876_v15 = vpop.f32.mrf.mxu0  ;;  %v925_v26 = vpop.f32.mrf.mxu1 }
 0x194   :  { %4998 = vst [vmem:[#allocation49_spill] sm:$0xff] %v4298_v16  ;;  %1832 = vmatpush.bf16.msra.mxu2 %v4022_v28  ;;  %1861 = vmatpush.bf16.msra.mxu3 %v4034_v10  ;;  %v877_v10 = vadd.f32 %v876_v15, %v3802_v54  ;;  %v926_v28 = vadd.f32 %v925_v26, %v3804_v56 }
 0x197   :  { %1626 = vmatmul.bf16.vlgmr.msrb.gmra.mxu2 %v4950_v5  ;;  %1655 = vmatmul.bf16.vlgmr.msrb.gmra.mxu3 %v4950_v5 }
 0x198   :  { %1833 = vmatpush.bf16.msra.mxu2 %v4085_v47  ;;  %1862 = vmatpush.bf16.msra.mxu3 %v4097_v17  ;;  %v1164_v17 = vadd.f32 %v4307_v42, %v3791_v50  ;;  %v1165_v47 = vadd.f32 %v4309_v8, %v3794_v51 }
 0x19a   :  { %v1038_v16 = vpop.f32.mrf.mxu2  ;;  %v1087_v25 = vpop.f32.mrf.mxu3 }
 0x19b   :  { %v1127_v55 = vadd.f32 %v1038_v16, %v877_v10  ;;  %v1128_v58 = vadd.f32 %v1087_v25, %v926_v28  ;;  %v878_v44 = vpop.f32.mrf.mxu0  ;;  %v927_v5 = vpop.f32.mrf.mxu1  ;;  %v1166_v16 = vadd.f32 %v4307_v42, %v3807_v62 }
 0x19c   :  { %1834 = vmatpush.bf16.msra.mxu2 %v4168_v2  ;;  %1863 = vmatpush.bf16.msra.mxu3 %v4174_v6  ;;  %v1196_v2 = vmax.f32 %v1164_v17, 0.0  ;;  %v1197_v6 = vmax.f32 %v1165_v47, 0.0  ;;  %v879_v51 = vadd.f32 %v878_v44, %v3812_v63  ;;  %v928_v25 = vadd.f32 %v927_v5, %v3814_v0 }
 0x19d   :  { %v1228_v54 = vadd.f32 %v4307_v42, %v1127_v55  ;;  %v1229_v56 = vadd.f32 %v4309_v8, %v1128_v58  ;;  %v1198_v62 = vmax.f32 %v1166_v16, 0.0 }
 0x19f   :  { %v1260_v15 = vmax.f32 %v1228_v54, 0.0  ;;  %v1261_v26 = vmax.f32 %v1229_v56, 0.0  ;;  %v1168_v56 = vadd.f32 %v4307_v42, %v3820_v9 }
 0x1a0   :  { %1835 = vmatpush.bf16.msra.mxu2 %v4211_v4  ;;  %1864 = vmatpush.bf16.msra.mxu3 %v4217_v38  ;;  %v1167_v38 = vadd.f32 %v4309_v8, %v3810_v33 }
 0x1a1   :  { %v1292_v50 = vmax.f32 %v1196_v2, %v1260_v15  ;;  %v1293_v29 = vmax.f32 %v1197_v6, %v1261_v26  ;;  %v1169_v15 = vadd.f32 %v4309_v8, %v3823_v14 }
 0x1a2   :  { %v1040_v10 = vpop.f32.mrf.mxu2  ;;  %v1089_v28 = vpop.f32.mrf.mxu3  ;;  %v1199_v44 = vmax.f32 %v1167_v38, 0.0 }
 0x1a3   :  { %v1324_v58 = vmax.f32 %v1292_v50, %v1293_v29  ;;  %v1129_v4 = vadd.f32 %v1040_v10, %v879_v51  ;;  %v1130_v17 = vadd.f32 %v1089_v28, %v928_v25  ;;  %v881_v47 = vpop.f32.mrf.mxu0  ;;  %v930_v55 = vpop.f32.mrf.mxu1  ;;  %v1201_v10 = vmax.f32 %v1169_v15, 0.0 }
 0x1a4   :  { %1836 = vmatpush.bf16.msra.mxu2 %v4256_v13  ;;  %1865 = vmatpush.bf16.msra.mxu3 %v4263_v48  ;;  %v882_v33 = vadd.f32 %v881_v47, %v3831_v39  ;;  %v931_v29 = vadd.f32 %v930_v55, %v3833_v40  ;;  %v1200_v40 = vmax.f32 %v1168_v56, 0.0 }
 0x1a5   :  { %v1230_v63 = vadd.f32 %v4307_v42, %v1129_v4  ;;  %v1231_v0 = vadd.f32 %v4309_v8, %v1130_v17 }
 0x1a7   :  { %v1262_v13 = vmax.f32 %v1230_v63, 0.0  ;;  %v1263_v5 = vmax.f32 %v1231_v0, 0.0  ;;  %v1171_v63 = vadd.f32 %v4309_v8, %v3839_v46  ;;  %v1172_v46 = vadd.f32 %v4307_v42, %v3849_v34 }
 0x1a8   :  { %1837 = vmatpush.bf16.msra.mxu2 %v4282_v30  ;;  %1866 = vmatpush.bf16.msra.mxu3 %v2894_v23 }
 0x1a9   :  { %v1294_v48 = vmax.f32 %v1198_v62, %v1262_v13  ;;  %v1295_v54 = vmax.f32 %v1199_v44, %v1263_v5 }
 0x1aa   :  { %v1043_v2 = vpop.f32.mrf.mxu2  ;;  %v1092_v6 = vpop.f32.mrf.mxu3 }
 0x1ab   :  { %v1325_v30 = vmax.f32 %v1294_v48, %v1295_v54  ;;  %v1131_v23 = vadd.f32 %v1043_v2, %v882_v33  ;;  %v1132_v26 = vadd.f32 %v1092_v6, %v931_v29  ;;  %v883_v50 = vpop.f32.mrf.mxu0  ;;  %v932_v51 = vpop.f32.mrf.mxu1  ;;  %v1203_v33 = vmax.f32 %v1171_v63, 0.0 }
 0x1ac   :  { %v884_v4 = vadd.f32 %v883_v50, %v3841_v24  ;;  %v933_v17 = vadd.f32 %v932_v51, %v3843_v21 }
 0x1ad   :  { %v4342_v25 = vpack.c.bf16 %v1325_v30, %v1324_v58  ;;  %v1232_v16 = vadd.f32 %v4307_v42, %v1131_v23  ;;  %v1233_v39 = vadd.f32 %v4309_v8, %v1132_v26  ;;  %v1170_v58 = vadd.f32 %v4307_v42, %v3836_v18 }
 0x1ae   :  { %v1173_v23 = vadd.f32 %v4309_v8, %v3852_v35 }
 0x1af   :  { %v1264_v28 = vmax.f32 %v1232_v16, 0.0  ;;  %v1265_v9 = vmax.f32 %v1233_v39, 0.0  ;;  %1488 = vmatmul.bf16.vlgmr.msrb.gmra.mxu0 %v4342_v25  ;;  %1517 = vmatmul.bf16.vlgmr.msrb.gmra.mxu1 %v4342_v25  ;;  %v1202_v24 = vmax.f32 %v1170_v58, 0.0 }
 0x1b1   :  { %v1296_v14 = vmax.f32 %v1200_v40, %v1264_v28  ;;  %v1297_v38 = vmax.f32 %v1201_v10, %v1265_v9  ;;  %v1205_v28 = vmax.f32 %v1173_v23, 0.0 }
 0x1b2   :  { %v1045_v47 = vpop.f32.mrf.mxu2  ;;  %v1094_v55 = vpop.f32.mrf.mxu3 }
 0x1b3   :  { %v1326_v0 = vmax.f32 %v1296_v14, %v1297_v38  ;;  %v1133_v62 = vadd.f32 %v1045_v47, %v884_v4  ;;  %v1134_v44 = vadd.f32 %v1094_v55, %v933_v17  ;;  %v886_v13 = vpop.f32.mrf.mxu0  ;;  %v935_v5 = vpop.f32.mrf.mxu1  ;;  %v1174_v17 = vadd.f32 %v4307_v42, %v3879_v61  ;;  %v3303_v61 = vld [vmem:[%s4926_s3 + $0x174] sm:$0xf] }
 0x1b4   :  { %v887_v2 = vadd.f32 %v886_v13, %v3860_v52  ;;  %v936_v6 = vadd.f32 %v935_v5, %v3862_v53  ;;  %v1204_v53 = vmax.f32 %v1172_v46, 0.0  ;;  %v1175_v55 = vadd.f32 %v4309_v8, %v3882_v32  ;;  %v3073_v5 = vld [vmem:[%s4926_s3 + $0x170] sm:$0xf]  ;;  %v3075_v32 = vld [vmem:[%s4926_s3 + $0x178] sm:$0xf0] }
 0x1b5   :  { %v1234_v48 = vadd.f32 %v4307_v42, %v1133_v62  ;;  %v1235_v54 = vadd.f32 %v4309_v8, %v1134_v44 }
 0x1b7   :  { %v1266_v21 = vmax.f32 %v1234_v48, 0.0  ;;  %v1267_v29 = vmax.f32 %v1235_v54, 0.0 }
 0x1b9   :  { %v1298_v56 = vmax.f32 %v1202_v24, %v1266_v21  ;;  %v1299_v18 = vmax.f32 %v1203_v33, %v1267_v29  ;;  %v3078_v24 = vor.u32 %v3303_v61, %v3075_v32  ;;  %v1206_v33 = vmax.f32 %v1174_v17, 0.0 }
 0x1ba   :  { %v1048_v15 = vpop.f32.mrf.mxu2  ;;  %v1097_v30 = vpop.f32.mrf.mxu3  ;;  %v1207_v21 = vmax.f32 %v1175_v55, 0.0 }
 0x1bb   :  { %v1327_v26 = vmax.f32 %v1298_v56, %v1299_v18  ;;  %v1135_v50 = vadd.f32 %v1048_v15, %v887_v2  ;;  %v1136_v51 = vadd.f32 %v1097_v30, %v936_v6  ;;  %v888_v16 = vpop.f32.mrf.mxu0  ;;  %v937_v39 = vpop.f32.mrf.mxu1  ;;  %1785 = vmatpush.bf16.msra.mxu1 %v3078_v24  ;;  %1975 = vmatpush.bf16.msrb.mxu3 %v3078_v24 }
 0x1bc   :  { %v889_v38 = vadd.f32 %v888_v16, %v3902_v45  ;;  %v938_v4 = vadd.f32 %v937_v39, %v3904_v1  ;;  %v3304_v45 = vld [vmem:[%s4926_s3 + $0x174] sm:$0xf0]  ;;  %v1176_v15 = vadd.f32 %v4307_v42, %v3913_v3  ;;  %v3065_v3 = vld [vmem:[%s4926_s3 + $0x160] sm:$0xf] }
 0x1bd   :  { %v4362_v40 = vpack.c.bf16 %v1327_v26, %v1326_v0  ;;  %v1236_v10 = vadd.f32 %v4307_v42, %v1135_v50  ;;  %v1237_v52 = vadd.f32 %v4309_v8, %v1136_v51  ;;  %v3074_v1 = vor.u32 %v3304_v45, %v3073_v5 }
 0x1be   :  { %v1177_v26 = vadd.f32 %v4309_v8, %v3916_v36  ;;  %v3301_v36 = vld [vmem:[%s4926_s3 + $0x164] sm:$0xf] }
 0x1bf   :  { %v1268_v9 = vmax.f32 %v1236_v10, 0.0  ;;  %v1269_v34 = vmax.f32 %v1237_v52, 0.0  ;;  %1631 = vmatmul.bf16.gmra.mxu2 %v4362_v40  ;;  %1660 = vmatmul.bf16.gmra.mxu3 %v4362_v40 }
 0x1c0   :  { %1756 = vmatpush.bf16.msra.mxu0 %v3074_v1  ;;  %1946 = vmatpush.bf16.msrb.mxu2 %v3074_v1  ;;  %v3057_v1 = vld [vmem:[%s4926_s3 + $0x150] sm:$0xf] }
 0x1c1   :  { %v1300_v35 = vmax.f32 %v1204_v53, %v1268_v9  ;;  %v1301_v14 = vmax.f32 %v1205_v28, %v1269_v34  ;;  %v1208_v28 = vmax.f32 %v1176_v15, 0.0  ;;  %v3067_v34 = vld [vmem:[%s4926_s3 + $0x168] sm:$0xf0]  ;;  %v1180_v15 = vadd.f32 %v4307_v42, %v3978_v12  ;;  %v3049_v12 = vld [vmem:[%s4926_s3 + $0x140] sm:$0xf] }
 0x1c2   :  { %v1050_v58 = vpop.f32.mrf.mxu2  ;;  %v1099_v47 = vpop.f32.mrf.mxu3 }
 0x1c3   :  { %v1328_v63 = vmax.f32 %v1300_v35, %v1301_v14  ;;  %v1137_v0 = vadd.f32 %v1050_v58, %v889_v38  ;;  %v1138_v62 = vadd.f32 %v1099_v47, %v938_v4  ;;  %v891_v44 = vpop.f32.mrf.mxu0  ;;  %v940_v13 = vpop.f32.mrf.mxu1  ;;  %v1209_v35 = vmax.f32 %v1177_v26, 0.0 }
 0x1c4   :  { %v892_v6 = vadd.f32 %v891_v44, %v3925_v43  ;;  %v941_v46 = vadd.f32 %v940_v13, %v3927_v49  ;;  %v3302_v49 = vld [vmem:[%s4926_s3 + $0x164] sm:$0xf0]  ;;  %v3070_v4 = vor.u32 %v3301_v36, %v3067_v34  ;;  %v1179_v44 = vadd.f32 %v4309_v8, %v3947_v59  ;;  %v3059_v59 = vld [vmem:[%s4926_s3 + $0x158] sm:$0xf0] }
 0x1c5   :  { %v1238_v48 = vadd.f32 %v4307_v42, %v1137_v0  ;;  %v1239_v54 = vadd.f32 %v4309_v8, %v1138_v62  ;;  %v3066_v9 = vor.u32 %v3302_v49, %v3065_v3  ;;  %v1212_v3 = vmax.f32 %v1180_v15, 0.0  ;;  %v4999_v34 = vld [vmem:[#allocation3_spill] sm:$0xff] }
 0x1c6   :  { %1786 = vmatpush.bf16.msra.mxu1 %v3070_v4  ;;  %1976 = vmatpush.bf16.msrb.mxu3 %v3070_v4  ;;  %v755_v36 = vadd.f32 %v4003_v41, %v3741_v37 }
 0x1c7   :  { %v1270_v29 = vmax.f32 %v1238_v48, 0.0  ;;  %v1271_v56 = vmax.f32 %v1239_v54, 0.0  ;;  %1757 = vmatpush.bf16.msra.mxu0 %v3066_v9  ;;  %1947 = vmatpush.bf16.msrb.mxu2 %v3066_v9  ;;  %v3051_v9 = vld [vmem:[%s4926_s3 + $0x148] sm:$0xf0] }
 0x1c9   :  { %v1302_v18 = vmax.f32 %v1206_v33, %v1270_v29  ;;  %v1303_v2 = vmax.f32 %v1207_v21, %v1271_v56  ;;  %v1211_v21 = vmax.f32 %v1179_v44, 0.0 }
 0x1ca   :  { %v1053_v30 = vpop.f32.mrf.mxu2  ;;  %v1102_v23 = vpop.f32.mrf.mxu3 }
 0x1cb   :  { %v1329_v50 = vmax.f32 %v1302_v18, %v1303_v2  ;;  %v1139_v51 = vadd.f32 %v1053_v30, %v892_v6  ;;  %v1140_v16 = vadd.f32 %v1102_v23, %v941_v46  ;;  %v893_v39 = vpop.f32.mrf.mxu0  ;;  %v942_v10 = vpop.f32.mrf.mxu1  ;;  %v1181_v30 = vadd.f32 %v4309_v8, %v3981_v60  ;;  %v3298_v60 = vld [vmem:[%s4926_s3 + $0x144] sm:$0xf0] }
 0x1cc   :  { %v894_v17 = vadd.f32 %v893_v39, %v3967_v11  ;;  %v943_v55 = vadd.f32 %v942_v10, %v3969_v7  ;;  %v3300_v7 = vld [vmem:[%s4926_s3 + $0x154] sm:$0xf0] }
 0x1cd   :  { %v4394_v52 = vpack.c.bf16 %v1329_v50, %v1328_v63  ;;  %v1240_v53 = vadd.f32 %v4307_v42, %v1139_v51  ;;  %v1241_v43 = vadd.f32 %v4309_v8, %v1140_v16  ;;  %v1178_v63 = vadd.f32 %v4307_v42, %v3944_v31  ;;  %v3299_v31 = vld [vmem:[%s4926_s3 + $0x154] sm:$0xf] }
 0x1ce   :  { %v3058_v32 = vor.u32 %v3300_v7, %v3057_v1  ;;  %v3062_v24 = vor.u32 %v3299_v31, %v3059_v59  ;;  %v1213_v49 = vmax.f32 %v1181_v30, 0.0  ;;  %v3041_v7 = vld [vmem:[%s4926_s3 + $0x130] sm:$0xf]  ;;  %v3296_v31 = vld [vmem:[%s4926_s3 + $0x134] sm:$0xf0] }
 0x1cf   :  { %v1272_v14 = vmax.f32 %v1240_v53, 0.0  ;;  %v1273_v38 = vmax.f32 %v1241_v43, 0.0  ;;  %1493 = vmatmul.bf16.gmra.mxu0 %v4394_v52  ;;  %1522 = vmatmul.bf16.gmra.mxu1 %v4394_v52  ;;  %v1210_v33 = vmax.f32 %v1178_v63, 0.0  ;;  %v3042_v59 = vor.u32 %v3296_v31, %v3041_v7  ;;  %v5004_v30 = vld [vmem:[#allocation22_spill] sm:$0xff] }
 0x1d0   :  { %1758 = vmatpush.bf16.msra.mxu0 %v3058_v32  ;;  %1948 = vmatpush.bf16.msrb.mxu2 %v3058_v32  ;;  %v3295_v32 = vld [vmem:[%s4926_s3 + $0x134] sm:$0xf] }
 0x1d1   :  { %v1304_v58 = vmax.f32 %v1208_v28, %v1272_v14  ;;  %v1305_v47 = vmax.f32 %v1209_v35, %v1273_v38  ;;  %1787 = vmatpush.bf16.msra.mxu1 %v3062_v24  ;;  %1977 = vmatpush.bf16.msrb.mxu3 %v3062_v24  ;;  %v3050_v28 = vor.u32 %v3298_v60, %v3049_v12  ;;  %v5000_v35 = vld [vmem:[#allocation14_spill] sm:$0xff] }
 0x1d2   :  { %v1055_v0 = vpop.f32.mrf.mxu2  ;;  %v1104_v62 = vpop.f32.mrf.mxu3  ;;  %v756_v14 = vadd.f32 %v5000_v35, %v4999_v34  ;;  %v3293_v34 = vld [vmem:[%s4926_s3 + $0x124] sm:$0xf] }
 0x1d3   :  { %v1330_v13 = vmax.f32 %v1304_v58, %v1305_v47  ;;  %v1141_v5 = vadd.f32 %v1055_v0, %v894_v17  ;;  %v1142_v45 = vadd.f32 %v1104_v62, %v943_v55  ;;  %v896_v11 = vpop.f32.mrf.mxu0  ;;  %v945_v61 = vpop.f32.mrf.mxu1  ;;  %v5001_v58 = vld [vmem:[#allocation17_spill] sm:$0xff]  ;;  %v5002_v55 = vld [vmem:[#allocation18_spill] sm:$0xff]  ;;  %v1182_v0 = vadd.f32 %v4307_v42, %v755_v36 }
 0x1d4   :  { %v897_v6 = vadd.f32 %v896_v11, %v3990_v19  ;;  %v946_v46 = vadd.f32 %v945_v61, %v3992_v22  ;;  %v3297_v22 = vld [vmem:[%s4926_s3 + $0x144] sm:$0xf]  ;;  %1759 = vmatpush.bf16.msra.mxu0 %v3050_v28  ;;  %1949 = vmatpush.bf16.msrb.mxu2 %v3050_v28  ;;  %v3033_v28 = vld [vmem:[%s4926_s3 + $0x120] sm:$0xf] }
 0x1d5   :  { %v1242_v48 = vadd.f32 %v4307_v42, %v1141_v5  ;;  %v1243_v54 = vadd.f32 %v4309_v8, %v1142_v45  ;;  %v3054_v17 = vor.u32 %v3297_v22, %v3051_v9  ;;  %v3294_v9 = vld [vmem:[%s4926_s3 + $0x124] sm:$0xf0] }
 0x1d7   :  { %v1274_v29 = vmax.f32 %v1242_v48, 0.0  ;;  %v1275_v56 = vmax.f32 %v1243_v54, 0.0  ;;  %1788 = vmatpush.bf16.msra.mxu1 %v3054_v17  ;;  %1978 = vmatpush.bf16.msrb.mxu3 %v3054_v17  ;;  %v3043_v48 = vld [vmem:[%s4926_s3 + $0x138] sm:$0xf0] }
 0x1d8   :  { %1760 = vmatpush.bf16.msra.mxu0 %v3042_v59  ;;  %1950 = vmatpush.bf16.msrb.mxu2 %v3042_v59 }
 0x1d9   :  { %v1306_v18 = vmax.f32 %v1210_v33, %v1274_v29  ;;  %v1307_v2 = vmax.f32 %v1211_v21, %v1275_v56  ;;  %v3046_v33 = vor.u32 %v3295_v32, %v3043_v48  ;;  %v1214_v21 = vmax.f32 %v1182_v0, 0.0 }
 0x1da   :  { %v1058_v23 = vpop.f32.mrf.mxu2  ;;  %v1107_v26 = vpop.f32.mrf.mxu3 }
 0x1db   :  { %v1331_v50 = vmax.f32 %v1306_v18, %v1307_v2  ;;  %v1143_v51 = vadd.f32 %v1058_v23, %v897_v6  ;;  %v1144_v16 = vadd.f32 %v1107_v26, %v946_v46  ;;  %v898_v39 = vpop.f32.mrf.mxu0  ;;  %v947_v10 = vpop.f32.mrf.mxu1  ;;  %1789 = vmatpush.bf16.msra.mxu1 %v3046_v33  ;;  %1979 = vmatpush.bf16.msrb.mxu3 %v3046_v33  ;;  %v5003_v46 = vld [vmem:[#allocation21_spill] sm:$0xff]  ;;  %v5005_v26 = vld [vmem:[#allocation19_spill] sm:$0xff] }
 0x1dc   :  { %v899_v47 = vadd.f32 %v898_v39, %v5001_v58  ;;  %v948_v63 = vadd.f32 %v947_v10, %v5002_v55  ;;  %v3034_v58 = vor.u32 %v3294_v9, %v3033_v28  ;;  %v3017_v9 = vld [vmem:[%s4926_s3 + $0x100] sm:$0xf] }
 0x1dd   :  { %v4438_v53 = vpack.c.bf16 %v1331_v50, %v1330_v13  ;;  %v1244_v43 = vadd.f32 %v4307_v42, %v1143_v51  ;;  %v1245_v19 = vadd.f32 %v4309_v8, %v1144_v16  ;;  %v1183_v13 = vadd.f32 %v4309_v8, %v756_v14  ;;  %v5006_v51 = vld [vmem:[#allocation20_spill] sm:$0xff] }
 0x1de   :  { %v1184_v50 = vadd.f32 %v4307_v42, %v5005_v26  ;;  %v1185_v16 = vadd.f32 %v4309_v8, %v5006_v51  ;;  %1761 = vmatpush.bf16.msra.mxu0 %v3034_v58  ;;  %1951 = vmatpush.bf16.msrb.mxu2 %v3034_v58 }
 0x1df   :  { %v1276_v38 = vmax.f32 %v1244_v43, 0.0  ;;  %v1277_v4 = vmax.f32 %v1245_v19, 0.0  ;;  %1636 = vmatmul.bf16.gmra.mxu2 %v4438_v53  ;;  %1665 = vmatmul.bf16.gmra.mxu3 %v4438_v53  ;;  %v1215_v29 = vmax.f32 %v1183_v13, 0.0 }
 0x1e0   :  { %v1216_v35 = vmax.f32 %v1184_v50, 0.0  ;;  %v1217_v14 = vmax.f32 %v1185_v16, 0.0 }
 0x1e1   :  { %v1308_v37 = vmax.f32 %v1212_v3, %v1276_v38  ;;  %v1309_v41 = vmax.f32 %v1213_v49, %v1277_v4  ;;  %v5007_v38 = vld [vmem:[#allocation4_spill] sm:$0xff]  ;;  %v5008_v4 = vld [vmem:[#allocation23_spill] sm:$0xff] }
 0x1e2   :  { %v1060_v62 = vpop.f32.mrf.mxu2  ;;  %v1109_v44 = vpop.f32.mrf.mxu3  ;;  %v759_v17 = vadd.f32 %v5008_v4, %v5007_v38 }
 0x1e3   :  { %v1332_v5 = vmax.f32 %v1308_v37, %v1309_v41  ;;  %v1145_v45 = vadd.f32 %v1060_v62, %v899_v47  ;;  %v1146_v11 = vadd.f32 %v1109_v44, %v948_v63  ;;  %v901_v61 = vpop.f32.mrf.mxu0  ;;  %v950_v1 = vpop.f32.mrf.mxu1  ;;  %v3035_v47 = vld [vmem:[%s4926_s3 + $0x128] sm:$0xf0]  ;;  %v5009_v37 = vld [vmem:[#allocation5_spill] sm:$0xff]  ;;  %v5011_v44 = vld [vmem:[#allocation27_spill] sm:$0xff] }
 0x1e4   :  { %v902_v15 = vadd.f32 %v901_v61, %v5003_v46  ;;  %v951_v23 = vadd.f32 %v950_v1, %v5004_v30  ;;  %v5010_v41 = vld [vmem:[#allocation24_spill] sm:$0xff]  ;;  %v3038_v62 = vor.u32 %v3293_v34, %v3035_v47  ;;  %v1186_v1 = vadd.f32 %v4307_v42, %v759_v17 }
 0x1e5   :  { %v1246_v54 = vadd.f32 %v4307_v42, %v1145_v45  ;;  %v1247_v24 = vadd.f32 %v4309_v8, %v1146_v11  ;;  %v760_v55 = vadd.f32 %v5010_v41, %v5009_v37  ;;  %v5012_v11 = vld [vmem:[#allocation28_spill] sm:$0xff] }
 0x1e6   :  { %1790 = vmatpush.bf16.msra.mxu1 %v3038_v62  ;;  %1980 = vmatpush.bf16.msrb.mxu3 %v3038_v62  ;;  %v1218_v30 = vmax.f32 %v1186_v1, 0.0  ;;  %v3290_v34 = vld [vmem:[%s4926_s3 + $0x104] sm:$0xf0]  ;;  %v3019_v37 = vld [vmem:[%s4926_s3 + $0x108] sm:$0xf0] }
 0x1e7   :  { %v1278_v56 = vmax.f32 %v1246_v54, 0.0  ;;  %v1279_v18 = vmax.f32 %v1247_v24, 0.0  ;;  %v1187_v32 = vadd.f32 %v4309_v8, %v760_v55  ;;  %v3018_v47 = vor.u32 %v3290_v34, %v3017_v9  ;;  %v5021_v1 = vld [vmem:[#allocation36_spill] sm:$0xff] }
 0x1e8   :  { %v1192_v34 = vadd.f32 %v4307_v42, %v4229_v20  ;;  %v5032_v20 = vld [vmem:[#allocation8_spill] sm:$0xff] }
 0x1e9   :  { %v1310_v2 = vmax.f32 %v1214_v21, %v1278_v56  ;;  %v1311_v6 = vmax.f32 %v1215_v29, %v1279_v18  ;;  %v3025_v21 = vld [vmem:[%s4926_s3 + $0x110] sm:$0xf]  ;;  %v3292_v29 = vld [vmem:[%s4926_s3 + $0x114] sm:$0xf0]  ;;  %v3291_v56 = vld [vmem:[%s4926_s3 + $0x114] sm:$0xf] }
 0x1ea   :  { %v1063_v39 = vpop.f32.mrf.mxu2  ;;  %v1112_v10 = vpop.f32.mrf.mxu3  ;;  %v3026_v18 = vor.u32 %v3292_v29, %v3025_v21  ;;  %v5024_v21 = vld [vmem:[#allocation42_spill] sm:$0xff] }
 0x1eb   :  { %v1333_v43 = vmax.f32 %v1310_v2, %v1311_v6  ;;  %v1147_v19 = vadd.f32 %v1063_v39, %v902_v15  ;;  %v1148_v12 = vadd.f32 %v1112_v10, %v951_v23  ;;  %v903_v60 = vpop.f32.mrf.mxu0  ;;  %v952_v22 = vpop.f32.mrf.mxu1  ;;  %v3027_v2 = vld [vmem:[%s4926_s3 + $0x118] sm:$0xf0]  ;;  %v1219_v23 = vmax.f32 %v1187_v32, 0.0  ;;  %v5013_v39 = vld [vmem:[#allocation33_spill] sm:$0xff] }
 0x1ec   :  { %v904_v13 = vadd.f32 %v903_v60, %v5011_v44  ;;  %v953_v61 = vadd.f32 %v952_v22, %v5012_v11  ;;  %v3030_v15 = vor.u32 %v3291_v56, %v3027_v2  ;;  %1762 = vmatpush.bf16.msra.mxu0 %v3026_v18  ;;  %1952 = vmatpush.bf16.msrb.mxu2 %v3026_v18  ;;  %v5016_v22 = vld [vmem:[#allocation30_spill] sm:$0xff] }
 0x1ed   :  { %v4484_v3 = vpack.c.bf16 %v1333_v43, %v1332_v5  ;;  %v1248_v49 = vadd.f32 %v4307_v42, %v1147_v19  ;;  %v1249_v36 = vadd.f32 %v4309_v8, %v1148_v12  ;;  %v5014_v43 = vld [vmem:[#allocation34_spill] sm:$0xff]  ;;  %v5015_v12 = vld [vmem:[#allocation29_spill] sm:$0xff] }
 0x1ee   :  { %1791 = vmatpush.bf16.msra.mxu1 %v3030_v15  ;;  %1981 = vmatpush.bf16.msrb.mxu3 %v3030_v15  ;;  %v1188_v60 = vadd.f32 %v4307_v42, %v5015_v12  ;;  %v5017_v44 = vld [vmem:[#allocation6_spill] sm:$0xff] }
 0x1ef   :  { %v1280_v63 = vmax.f32 %v1248_v49, 0.0  ;;  %v1281_v0 = vmax.f32 %v1249_v36, 0.0  ;;  %1498 = vmatmul.bf16.gmra.mxu0 %v4484_v3  ;;  %1527 = vmatmul.bf16.gmra.mxu1 %v4484_v3  ;;  %v1189_v49 = vadd.f32 %v4309_v8, %v5016_v22  ;;  %v5028_v22 = vld [vmem:[#allocation16_spill] sm:$0xff] }
 0x1f0   :  { %1763 = vmatpush.bf16.msra.mxu0 %v3018_v47  ;;  %1953 = vmatpush.bf16.msrb.mxu2 %v3018_v47  ;;  %v1220_v62 = vmax.f32 %v1188_v60, 0.0 }
 0x1f1   :  { %v1312_v5 = vmax.f32 %v1216_v35, %v1280_v63  ;;  %v1313_v45 = vmax.f32 %v1217_v14, %v1281_v0  ;;  %v3289_v35 = vld [vmem:[%s4926_s3 + $0x104] sm:$0xf]  ;;  %v1221_v11 = vmax.f32 %v1189_v49, 0.0 }
 0x1f2   :  { %v1065_v7 = vpop.f32.mrf.mxu2  ;;  %v1114_v31 = vpop.f32.mrf.mxu3  ;;  %v3022_v41 = vor.u32 %v3289_v35, %v3019_v37 }
 0x1f3   :  { %v1334_v59 = vmax.f32 %v1312_v5, %v1313_v45  ;;  %v1149_v48 = vadd.f32 %v1065_v7, %v904_v13  ;;  %v1150_v54 = vadd.f32 %v1114_v31, %v953_v61  ;;  %v906_v24 = vpop.f32.mrf.mxu0  ;;  %v955_v33 = vpop.f32.mrf.mxu1  ;;  %v5018_v13 = vld [vmem:[#allocation35_spill] sm:$0xff]  ;;  %v5019_v45 = vld [vmem:[#allocation10_spill] sm:$0xff] }
 0x1f4   :  { %v907_v10 = vadd.f32 %v906_v24, %v5013_v39  ;;  %v956_v19 = vadd.f32 %v955_v33, %v5014_v43  ;;  %v763_v5 = vadd.f32 %v5018_v13, %v5017_v44  ;;  %1792 = vmatpush.bf16.msra.mxu1 %v3022_v41  ;;  %1888 = vmatpush.bf16.msrb.mxu0 %v5019_v45  ;;  %v5020_v61 = vld [vmem:[#allocation7_spill] sm:$0xff]  ;;  %v5023_v24 = vld [vmem:[#allocation41_spill] sm:$0xff] }
 0x1f5   :  { %v1250_v6 = vadd.f32 %v4307_v42, %v1149_v48  ;;  %v1251_v46 = vadd.f32 %v4309_v8, %v1150_v54  ;;  %v764_v7 = vadd.f32 %v5021_v1, %v5020_v61  ;;  %1982 = vmatpush.bf16.msrb.mxu3 %v3022_v41  ;;  %v5031_v41 = vld [vmem:[#allocation26_spill] sm:$0xff]  ;;  %v5034_v45 = vld [vmem:[#allocation31_spill] sm:$0xff]  ;;  %v5035_v61 = vld [vmem:[#allocation9_spill] sm:$0xff] }
 0x1f6   :  { %v1190_v56 = vadd.f32 %v4307_v42, %v763_v5  ;;  %v5036_v1 = vld [vmem:[#allocation47_spill] sm:$0xff] }
 0x1f7   :  { %v1282_v26 = vmax.f32 %v1250_v6, 0.0  ;;  %v1283_v50 = vmax.f32 %v1251_v46, 0.0  ;;  %v5025_v6 = vld [vmem:[#allocation12_spill] sm:$0xff]  ;;  %v1191_v46 = vadd.f32 %v4309_v8, %v764_v7  ;;  %v768_v7 = vadd.f32 %v5036_v1, %v5035_v61 }
 0x1f8   :  { %1889 = vmatpush.bf16.msrb.mxu0 %v5025_v6  ;;  %v1222_v43 = vmax.f32 %v1190_v56, 0.0  ;;  %v5040_v6 = vld [vmem:[#allocation37_spill] sm:$0xff] }
 0x1f9   :  { %v1314_v51 = vmax.f32 %v1218_v30, %v1282_v26  ;;  %v1315_v16 = vmax.f32 %v1219_v23, %v1283_v50 }
 0x1fa   :  { %v1068_v36 = vpop.f32.mrf.mxu2  ;;  %v1117_v28 = vpop.f32.mrf.mxu3 }
 0x1fb   :  { %v1335_v14 = vmax.f32 %v1314_v51, %v1315_v16  ;;  %v1151_v38 = vadd.f32 %v1068_v36, %v907_v10  ;;  %v1152_v4 = vadd.f32 %v1117_v28, %v956_v19  ;;  %v908_v17 = vpop.f32.mrf.mxu0  ;;  %v957_v58 = vpop.f32.mrf.mxu1  ;;  %v5026_v51 = vld [vmem:[#allocation13_spill] sm:$0xff]  ;;  %v5027_v10 = vld [vmem:[#allocation15_spill] sm:$0xff]  ;;  %v1223_v19 = vmax.f32 %v1191_v46, 0.0 }
 0x1fc   :  { %v909_v33 = vadd.f32 %v908_v17, %v5023_v24  ;;  %v958_v29 = vadd.f32 %v957_v58, %v5024_v21  ;;  %1890 = vmatpush.bf16.msrb.mxu0 %v5027_v10  ;;  %v1195_v46 = vadd.f32 %v4309_v8, %v768_v7 }
 0x1fd   :  { %v4542_v55 = vpack.c.bf16 %v1335_v14, %v1334_v59  ;;  %v1252_v63 = vadd.f32 %v4307_v42, %v1151_v38  ;;  %v1253_v0 = vadd.f32 %v4309_v8, %v1152_v4  ;;  %v5022_v59 = vld [vmem:[#allocation11_spill] sm:$0xff]  ;;  %v5029_v38 = vld [vmem:[#allocation25_spill] sm:$0xff] }
 0x1fe   :  { %1917 = vmatpush.bf16.msrb.mxu1 %v5022_v59  ;;  %v5030_v4 = vld [vmem:[#allocation43_spill] sm:$0xff]  ;;  %v1227_v10 = vmax.f32 %v1195_v46, 0.0 }
 0x1ff   :  { %v1284_v31 = vmax.f32 %v1252_v63, 0.0  ;;  %v1285_v32 = vmax.f32 %v1253_v0, 0.0  ;;  %1641 = vmatmul.bf16.gmra.mxu2 %v4542_v55  ;;  %1670 = vmatmul.bf16.gmra.mxu3 %v4542_v55  ;;  %v1193_v17 = vadd.f32 %v4309_v8, %v5030_v4  ;;  %v1224_v0 = vmax.f32 %v1192_v34, 0.0 }
 0x200   :  { %1891 = vmatpush.bf16.msrb.mxu0 %v5029_v38 }
 0x201   :  { %v1316_v48 = vmax.f32 %v1220_v62, %v1284_v31  ;;  %v1317_v54 = vmax.f32 %v1221_v11, %v1285_v32  ;;  %v5033_v62 = vld [vmem:[#allocation46_spill] sm:$0xff]  ;;  %v1225_v11 = vmax.f32 %v1193_v17, 0.0 }
 0x202   :  { %v1070_v18 = vpop.f32.mrf.mxu2  ;;  %v1119_v2 = vpop.f32.mrf.mxu3  ;;  %1918 = vmatpush.bf16.msrb.mxu1 %v5026_v51  ;;  %v767_v44 = vadd.f32 %v5033_v62, %v5032_v20  ;;  %v5041_v51 = vld [vmem:[#allocation38_spill] sm:$0xff] }
 0x203   :  { %v1336_v15 = vmax.f32 %v1316_v48, %v1317_v54  ;;  %v1153_v30 = vadd.f32 %v1070_v18, %v909_v33  ;;  %v1154_v23 = vadd.f32 %v1119_v2, %v958_v29  ;;  %v911_v26 = vpop.f32.mrf.mxu0  ;;  %v960_v50 = vpop.f32.mrf.mxu1  ;;  %v5037_v54 = vld [vmem:[#allocation48_spill] sm:$0xff]  ;;  %v5038_v33 = vld [vmem:[#allocation49_spill] sm:$0xff] }
 0x204   :  { %v912_v28 = vadd.f32 %v911_v26, %v4278_v57  ;;  %v961_v9 = vadd.f32 %v960_v50, %v4280_v27  ;;  %1892 = vmatpush.bf16.msrb.mxu0 %v5034_v45  ;;  %v5039_v29 = vld [vmem:[#allocation32_spill] sm:$0xff]  ;;  %v1194_v56 = vadd.f32 %v4307_v42, %v767_v44 }
 0x205   :  { %v1254_v16 = vadd.f32 %v4307_v42, %v1153_v30  ;;  %v1255_v39 = vadd.f32 %v4309_v8, %v1154_v23 }
 0x206   :  { %1919 = vmatpush.bf16.msrb.mxu1 %v5028_v22  ;;  %v5043_v22 = vld [vmem:[#allocation40_spill] sm:$0xff] }
 0x207   :  { %v1286_v12 = vmax.f32 %v1254_v16, 0.0  ;;  %v1287_v60 = vmax.f32 %v1255_v39, 0.0  ;;  %v5042_v16 = vld [vmem:[#allocation39_spill] sm:$0xff]  ;;  %v1226_v39 = vmax.f32 %v1194_v56, 0.0 }
 0x208   :  { %1893 = vmatpush.bf16.msrb.mxu0 %v5040_v6 }
 0x209   :  { %v1318_v49 = vmax.f32 %v1222_v43, %v1286_v12  ;;  %v1319_v36 = vmax.f32 %v1223_v19, %v1287_v60 }
 0x20a   :  { %v1073_v35 = vpop.f32.mrf.mxu2  ;;  %v1122_v14 = vpop.f32.mrf.mxu3  ;;  %1920 = vmatpush.bf16.msrb.mxu1 %v5031_v41 }
 0x20b   :  { %v1337_v58 = vmax.f32 %v1318_v49, %v1319_v36  ;;  %v1155_v47 = vadd.f32 %v1073_v35, %v912_v28  ;;  %v1156_v37 = vadd.f32 %v1122_v14, %v961_v9  ;;  %v913_v13 = vpop.f32.mrf.mxu0  ;;  %v962_v5 = vpop.f32.mrf.mxu1  ;;  %v5044_v49 = vld [vmem:[#allocation44_spill] sm:$0xff]  ;;  %v5045_v9 = vld [vmem:[#allocation45_spill] sm:$0xff] }
 0x20c   :  { %v914_v24 = vadd.f32 %v913_v13, %v5037_v54  ;;  %v963_v21 = vadd.f32 %v962_v5, %v5038_v33  ;;  %1894 = vmatpush.bf16.msrb.mxu0 %v5042_v16 }
 0x20d   :  { %v4572_v63 = vpack.c.bf16 %v1337_v58, %v1336_v15  ;;  %v1256_v57 = vadd.f32 %v4307_v42, %v1155_v47  ;;  %v1257_v27 = vadd.f32 %v4309_v8, %v1156_v37 }
 0x20e   :  { %1921 = vmatpush.bf16.msrb.mxu1 %v5039_v29 }
 0x20f   :  { %v1288_v31 = vmax.f32 %v1256_v57, 0.0  ;;  %v1289_v32 = vmax.f32 %v1257_v27, 0.0  ;;  %1503 = vmatmul.bf16.gmra.mxu0 %v4572_v63  ;;  %1532 = vmatmul.bf16.gmra.mxu1 %v4572_v63 }
 0x210   :  { %1838 = vmatmul.bf16.vlgmr.msra.gmra.mxu2 %v4362_v40  ;;  %1867 = vmatmul.bf16.vlgmr.msra.gmra.mxu3 %v4362_v40 }
 0x211   :  { %v1320_v59 = vmax.f32 %v1224_v0, %v1288_v31  ;;  %v1321_v48 = vmax.f32 %v1225_v11, %v1289_v32  ;;  %1895 = vmatpush.bf16.msrb.mxu0 %v5044_v49 }
 0x212   :  { %v1075_v18 = vpop.f32.mrf.mxu2  ;;  %v1124_v2 = vpop.f32.mrf.mxu3  ;;  %1922 = vmatpush.bf16.msrb.mxu1 %v5041_v51 }
 0x213   :  { %v1338_v15 = vmax.f32 %v1320_v59, %v1321_v48  ;;  %v1157_v30 = vadd.f32 %v1075_v18, %v914_v24  ;;  %v1158_v23 = vadd.f32 %v1124_v2, %v963_v21  ;;  %v5046_v24 = vmov 0.0|0.0  }
 0x215   :  { %v1258_v26 = vadd.f32 %v4307_v42, %v1157_v30  ;;  %v1259_v50 = vadd.f32 %v4309_v8, %v1158_v23 }
 0x216   :  { %1923 = vmatpush.bf16.msrb.mxu1 %v5043_v22 }
 0x217   :  { %v1290_v43 = vmax.f32 %v1258_v26, 0.0  ;;  %v1291_v19 = vmax.f32 %v1259_v50, 0.0 }
 0x219   :  { %v1322_v12 = vmax.f32 %v1226_v39, %v1290_v43  ;;  %v1323_v60 = vmax.f32 %v1227_v10, %v1291_v19 }
 0x21a   :  { %1924 = vmatpush.bf16.msrb.mxu1 %v5045_v9  ;;  %v1627_v42 = vpop.f32.mrf.mxu2  ;;  %v1656_v8 = vpop.f32.mrf.mxu3 }
 0x21b   :  { %v1339_v36 = vmax.f32 %v1322_v12, %v1323_v60 }
 0x21d   :  { %v1348_v28 = vpack.c.bf16 %v1339_v36, %v1338_v15 }
 0x21f   :  { %1764 = vmatmul.bf16.vlgmr.msra.gmra.mxu0 %v4362_v40  ;;  %1793 = vmatmul.bf16.vlgmr.msra.gmra.mxu1 %v4362_v40 }
 0x220   :  { %1843 = vmatmul.bf16.gmra.mxu2 %v4438_v53  ;;  %1872 = vmatmul.bf16.gmra.mxu3 %v4438_v53 }
 0x222   :  { %v4612_v40 = vpop.f32.mrf.mxu2  ;;  %v4614_v4 = vpop.f32.mrf.mxu3 }
 0x22c   :  { %v1489_v34 = vpop.f32.mrf.mxu0  ;;  %v1518_v35 = vpop.f32.mrf.mxu1 }
 0x22d   :  { %v4602_v14 = vadd.f32 %v1627_v42, %v1489_v34  ;;  %v4604_v38 = vadd.f32 %v1656_v8, %v1518_v35 }
 0x22f   :  { %1769 = vmatmul.bf16.gmra.mxu0 %v4438_v53  ;;  %1798 = vmatmul.bf16.gmra.mxu1 %v4438_v53 }
 0x230   :  { %1848 = vmatmul.bf16.gmra.mxu2 %v4542_v55  ;;  %1877 = vmatmul.bf16.gmra.mxu3 %v4542_v55 }
 0x234   :  { %v4616_v17 = vpop.f32.mrf.mxu0  ;;  %v4618_v58 = vpop.f32.mrf.mxu1 }
 0x23f   :  { %1774 = vmatmul.bf16.gmra.mxu0 %v4542_v55  ;;  %1803 = vmatmul.bf16.gmra.mxu1 %v4542_v55 }
 0x240   :  { %1853 = vmatmul.bf16.gmra.mxu2 %v1348_v28  ;;  %1882 = vmatmul.bf16.gmra.mxu3 %v1348_v28 }
 0x242   :  { %v1632_v47 = vpop.f32.mrf.mxu2  ;;  %v1661_v53 = vpop.f32.mrf.mxu3 }
 0x24a   :  { %v1634_v55 = vpop.f32.mrf.mxu2  ;;  %v1663_v0 = vpop.f32.mrf.mxu3 }
 0x24c   :  { %v1494_v37 = vpop.f32.mrf.mxu0  ;;  %v1523_v41 = vpop.f32.mrf.mxu1 }
 0x24d   :  { %v4620_v57 = vadd.f32 %v1632_v47, %v1494_v37  ;;  %v4622_v27 = vadd.f32 %v1661_v53, %v1523_v41  ;;  %v3312_v53 = vld [vmem:[%s4929_s5 + $0x38] sm:$0xff] }
 0x24e   :  { %2192 = vmatpush.bf16.msra.mxu0 %v3312_v53 }
 0x24f   :  { %1779 = vmatmul.bf16.gmra.mxu0 %v1348_v28  ;;  %1808 = vmatmul.bf16.gmra.mxu1 %v1348_v28 }
 0x250   :  { %1954 = vmatmul.bf16.vlgmr.msrb.gmra.mxu2 %v4394_v52  ;;  %1983 = vmatmul.bf16.vlgmr.msrb.gmra.mxu3 %v4394_v52 }
 0x254   :  { %v1496_v20 = vpop.f32.mrf.mxu0  ;;  %v1525_v62 = vpop.f32.mrf.mxu1 }
 0x255   :  { %v4626_v44 = vadd.f32 %v1634_v55, %v1496_v20  ;;  %v4628_v13 = vadd.f32 %v1663_v0, %v1525_v62  ;;  %v3310_v62 = vld [vmem:[%s4929_s5 + $0x28] sm:$0xff] }
 0x25f   :  { %1896 = vmatmul.bf16.vlgmr.msrb.gmra.mxu0 %v4342_v25  ;;  %1925 = vmatmul.bf16.vlgmr.msrb.gmra.mxu1 %v4342_v25 }
 0x260   :  { %1959 = vmatmul.bf16.gmra.mxu2 %v4484_v3  ;;  %1988 = vmatmul.bf16.gmra.mxu3 %v4484_v3 }
 0x262   :  { %v1637_v5 = vpop.f32.mrf.mxu2  ;;  %v1666_v45 = vpop.f32.mrf.mxu3 }
 0x26a   :  { %v1639_v25 = vpop.f32.mrf.mxu2  ;;  %v1668_v31 = vpop.f32.mrf.mxu3 }
 0x26c   :  { %v1499_v11 = vpop.f32.mrf.mxu0  ;;  %v1528_v61 = vpop.f32.mrf.mxu1 }
 0x26d   :  { %v4634_v1 = vadd.f32 %v1637_v5, %v1499_v11  ;;  %v4636_v7 = vadd.f32 %v1666_v45, %v1528_v61  ;;  %v3309_v5 = vld [vmem:[%s4929_s5 + $0x20] sm:$0xff] }
 0x26f   :  { %1901 = vmatmul.bf16.gmra.mxu0 %v4394_v52  ;;  %1930 = vmatmul.bf16.gmra.mxu1 %v4394_v52 }
 0x270   :  { %1964 = vmatmul.bf16.gmra.mxu2 %v4572_v63  ;;  %1993 = vmatmul.bf16.gmra.mxu3 %v4572_v63 }
 0x274   :  { %v1501_v32 = vpop.f32.mrf.mxu0  ;;  %v1530_v59 = vpop.f32.mrf.mxu1 }
 0x275   :  { %v4642_v48 = vadd.f32 %v1639_v25, %v1501_v32  ;;  %v4644_v54 = vadd.f32 %v1668_v31, %v1530_v59  ;;  %v3320_v25 = vld [vmem:[%s4929_s5 + $0x78] sm:$0xff]  ;;  %v3307_v59 = vld [vmem:[%s4929_s5 + $0x10] sm:$0xff] }
 0x276   :  { %2281 = vmatpush.bf16.msra.mxu1 %v3320_v25 }
 0x27f   :  { %1906 = vmatmul.bf16.gmra.mxu0 %v4484_v3  ;;  %1935 = vmatmul.bf16.gmra.mxu1 %v4484_v3 }
 0x280   :  { %1969 = vmatmul.bf16.gmra.mxu2 %v5046_v24  ;;  %1998 = vmatmul.bf16.gmra.mxu3 %v5046_v24 }
 0x282   :  { %v1642_v52 = vpop.f32.mrf.mxu2  ;;  %v1671_v33 = vpop.f32.mrf.mxu3 }
 0x28a   :  { %v1644_v21 = vpop.f32.mrf.mxu2  ;;  %v1673_v29 = vpop.f32.mrf.mxu3 }
 0x28c   :  { %v1504_v56 = vpop.f32.mrf.mxu0  ;;  %v1533_v18 = vpop.f32.mrf.mxu1 }
 0x28d   :  { %v4650_v2 = vadd.f32 %v1642_v52, %v1504_v56  ;;  %v4652_v6 = vadd.f32 %v1671_v33, %v1533_v18 }
 0x28f   :  { %1911 = vmatmul.bf16.gmra.mxu0 %v4572_v63  ;;  %1940 = vmatmul.bf16.gmra.mxu1 %v4572_v63 }
 0x293   :  { %v4656_v46 = vpop.f32.mrf.mxu2  ;;  %v4658_v3 = vpop.f32.mrf.mxu3 }
 0x294   :  { %v1506_v15 = vpop.f32.mrf.mxu0  ;;  %v1535_v30 = vpop.f32.mrf.mxu1 }
 0x295   :  { %v4660_v23 = vadd.f32 %v1644_v21, %v1506_v15  ;;  %v4662_v26 = vadd.f32 %v1673_v29, %v1535_v30  ;;  %v3306_v21 = vld [vmem:[%s4929_s5 + $0x8] sm:$0xff]  ;;  %v3305_v15 = vld [vmem:[%s4929_s5] sm:$0xff] }
 0x296   :  { %v3318_v29 = vld [vmem:[%s4929_s5 + $0x68] sm:$0xff] }
 0x29b   :  { %v4664_v50 = vpop.f32.mrf.mxu2  ;;  %v4666_v51 = vpop.f32.mrf.mxu3 }
 0x29c   :  { %v1765_v16 = vpop.f32.mrf.mxu0  ;;  %v1794_v39 = vpop.f32.mrf.mxu1 }
 0x29d   :  { %v4669_v10 = vadd.f32 %v1765_v16, %v4602_v14  ;;  %v4672_v63 = vadd.f32 %v1794_v39, %v4604_v38  ;;  %v3317_v39 = vld [vmem:[%s4929_s5 + $0x60] sm:$0xff] }
 0x2a3   :  { %v4674_v43 = vpop.f32.mrf.mxu2  ;;  %v4676_v19 = vpop.f32.mrf.mxu3 }
 0x2a4   :  { %v4678_v12 = vpop.f32.mrf.mxu0  ;;  %v4680_v60 = vpop.f32.mrf.mxu1 }
 0x2ab   :  { %v4682_v22 = vpop.f32.mrf.mxu2  ;;  %v4684_v49 = vpop.f32.mrf.mxu3 }
 0x2ac   :  { %v1770_v36 = vpop.f32.mrf.mxu0  ;;  %v1799_v28 = vpop.f32.mrf.mxu1 }
 0x2ad   :  { %v4687_v9 = vadd.f32 %v1770_v36, %v4620_v57  ;;  %v4690_v42 = vadd.f32 %v1799_v28, %v4622_v27  ;;  %v3311_v57 = vld [vmem:[%s4929_s5 + $0x30] sm:$0xff] }
 0x2ae   :  { %2193 = vmatpush.bf16.msra.mxu0 %v3311_v57 }
 0x2b2   :  { %2194 = vmatpush.bf16.msra.mxu0 %v3310_v62  ;;  %v3315_v62 = vld [vmem:[%s4929_s5 + $0x50] sm:$0xff] }
 0x2b3   :  { %v4692_v8 = vpop.f32.mrf.mxu2  ;;  %v4694_v34 = vpop.f32.mrf.mxu3 }
 0x2b4   :  { %v1772_v35 = vpop.f32.mrf.mxu0  ;;  %v1801_v14 = vpop.f32.mrf.mxu1 }
 0x2b5   :  { %v4697_v38 = vadd.f32 %v1772_v35, %v4626_v44  ;;  %v4700_v47 = vadd.f32 %v1801_v14, %v4628_v13  ;;  %v1399_v35 = vld [vmem:[%s4930_s4] sm:$0x3]  ;;  %v3316_v14 = vld [vmem:[%s4929_s5 + $0x58] sm:$0xff] }
 0x2b6   :  { %2195 = vmatpush.bf16.msra.mxu0 %v3309_v5  ;;  %v4786_v53 = vperm.slane %v1399_v35, 0 }
 0x2b8   :  { %v2025_v25 = vadd.f32 %v4786_v53, %v4669_v10  ;;  %v1659_v10 = vadd.f32 %v4614_v4, %v4618_v58  ;;  %v3325_v4 = vld [vmem:[%s4929_s5 + $0xa0] sm:$0xff] }
 0x2bb   :  { %v4705_v37 = vpop.f32.mrf.mxu2  ;;  %v4707_v41 = vpop.f32.mrf.mxu3 }
 0x2bc   :  { %v1775_v27 = vpop.f32.mrf.mxu0  ;;  %v1804_v55 = vpop.f32.mrf.mxu1 }
 0x2bd   :  { %v4713_v0 = vadd.f32 %v1775_v27, %v4634_v1  ;;  %v4716_v20 = vadd.f32 %v1804_v55, %v4636_v7  ;;  %v3308_v7 = vld [vmem:[%s4929_s5 + $0x18] sm:$0xff]  ;;  %v3327_v27 = vld [vmem:[%s4929_s5 + $0xb0] sm:$0xff] }
 0x2be   :  { %2196 = vmatpush.bf16.msra.mxu0 %v3308_v7  ;;  %v3335_v55 = vld [vmem:[%s4929_s5 + $0xf0] sm:$0xff] }
 0x2c2   :  { %2197 = vmatpush.bf16.msra.mxu0 %v3307_v59 }
 0x2c3   :  { %v4721_v44 = vpop.f32.mrf.mxu2  ;;  %v4723_v13 = vpop.f32.mrf.mxu3 }
 0x2c4   :  { %v1777_v45 = vpop.f32.mrf.mxu0  ;;  %v1806_v11 = vpop.f32.mrf.mxu1 }
 0x2c5   :  { %v4729_v61 = vadd.f32 %v1777_v45, %v4642_v48  ;;  %v4732_v1 = vadd.f32 %v1806_v11, %v4644_v54  ;;  %v3319_v48 = vld [vmem:[%s4929_s5 + $0x70] sm:$0xff] }
 0x2c6   :  { %2282 = vmatpush.bf16.msra.mxu1 %v3319_v48  ;;  %2198 = vmatpush.bf16.msra.mxu0 %v3306_v21 }
 0x2ca   :  { %2283 = vmatpush.bf16.msra.mxu1 %v3318_v29  ;;  %2199 = vmatpush.bf16.msra.mxu0 %v3305_v15  ;;  %v2041_v29 = vmax.f32 %v2025_v25, 0.0 }
 0x2cb   :  { %v4740_v31 = vpop.f32.mrf.mxu2  ;;  %v4742_v32 = vpop.f32.mrf.mxu3 }
 0x2cc   :  { %v1780_v54 = vpop.f32.mrf.mxu0  ;;  %v1809_v24 = vpop.f32.mrf.mxu1 }
 0x2cd   :  { %v4751_v52 = vadd.f32 %v1780_v54, %v4650_v2  ;;  %v4754_v33 = vadd.f32 %v1809_v24, %v4652_v6  ;;  %v3328_v2 = vld [vmem:[%s4929_s5 + $0xb8] sm:$0xff]  ;;  %v3326_v24 = vld [vmem:[%s4929_s5 + $0xa8] sm:$0xff] }
 0x2ce   :  { %v3336_v6 = vld [vmem:[%s4929_s5 + $0xf8] sm:$0xff]  ;;  %2367 = vmatpush.bf16.msra.mxu2 %v3328_v2  ;;  %2284 = vmatpush.bf16.msra.mxu1 %v3317_v39  ;;  %v1817_v2 = vadd.f32 %v4680_v60, %v1659_v10 }
 0x2cf   :  { %2453 = vmatpush.bf16.msra.mxu3 %v3336_v6 }
 0x2d2   :  { %2285 = vmatpush.bf16.msra.mxu1 %v3316_v14  ;;  %2368 = vmatpush.bf16.msra.mxu2 %v3327_v27 }
 0x2d3   :  { %v1955_v56 = vpop.f32.mrf.mxu2  ;;  %v1984_v18 = vpop.f32.mrf.mxu3  ;;  %2454 = vmatpush.bf16.msra.mxu3 %v3335_v55 }
 0x2d4   :  { %v1782_v30 = vpop.f32.mrf.mxu0  ;;  %v1811_v16 = vpop.f32.mrf.mxu1 }
 0x2d5   :  { %v4775_v36 = vadd.f32 %v1782_v30, %v4660_v23  ;;  %v4778_v28 = vadd.f32 %v1811_v16, %v4662_v26  ;;  %v4788_v23 = vperm.slane %v1399_v35, 1 }
 0x2d6   :  { %2286 = vmatpush.bf16.msra.mxu1 %v3315_v62  ;;  %2369 = vmatpush.bf16.msra.mxu2 %v3326_v24 }
 0x2d7   :  { %v2026_v59 = vadd.f32 %v4788_v23, %v4672_v63  ;;  %v2028_v55 = vadd.f32 %v4788_v23, %v1817_v2 }
 0x2d9   :  { %v2044_v25 = vmax.f32 %v2028_v55, 0.0 }
 0x2da   :  { %2370 = vmatpush.bf16.msra.mxu2 %v3325_v4 }
 0x2db   :  { %v1957_v57 = vpop.f32.mrf.mxu2  ;;  %v1986_v26 = vpop.f32.mrf.mxu3 }
 0x2dc   :  { %v1897_v5 = vpop.f32.mrf.mxu0  ;;  %v1926_v45 = vpop.f32.mrf.mxu1 }
 0x2dd   :  { %v1898_v11 = vadd.f32 %v1897_v5, %v4656_v46  ;;  %v1927_v7 = vadd.f32 %v1926_v45, %v4658_v3  ;;  %v3314_v46 = vld [vmem:[%s4929_s5 + $0x48] sm:$0xff]  ;;  %v1630_v3 = vadd.f32 %v4612_v40, %v4616_v17  ;;  %v3313_v17 = vld [vmem:[%s4929_s5 + $0x40] sm:$0xff] }
 0x2de   :  { %2287 = vmatpush.bf16.msra.mxu1 %v3314_v46  ;;  %v3334_v40 = vld [vmem:[%s4929_s5 + $0xe8] sm:$0xff] }
 0x2df   :  { %v2004_v48 = vadd.f32 %v1955_v56, %v1898_v11  ;;  %v2005_v54 = vadd.f32 %v1984_v18, %v1927_v7  ;;  %v1816_v56 = vadd.f32 %v4678_v12, %v1630_v3  ;;  %v2042_v18 = vmax.f32 %v2026_v59, 0.0  ;;  %2455 = vmatpush.bf16.msra.mxu3 %v3334_v40  ;;  %v3324_v11 = vld [vmem:[%s4929_s5 + $0x98] sm:$0xff]  ;;  %v3322_v40 = vld [vmem:[%s4929_s5 + $0x88] sm:$0xff] }
 0x2e0   :  { %2371 = vmatpush.bf16.msra.mxu2 %v3324_v11 }
 0x2e1   :  { %v2057_v21 = vadd.f32 %v4786_v53, %v2004_v48  ;;  %v2058_v63 = vadd.f32 %v4788_v23, %v2005_v54  ;;  %v2027_v27 = vadd.f32 %v4786_v53, %v1816_v56  ;;  %v3333_v54 = vld [vmem:[%s4929_s5 + $0xe0] sm:$0xff] }
 0x2e2   :  { %2288 = vmatpush.bf16.msra.mxu1 %v3313_v17 }
 0x2e3   :  { %v2073_v6 = vmax.f32 %v2057_v21, 0.0  ;;  %v2074_v15 = vmax.f32 %v2058_v63, 0.0  ;;  %v1960_v39 = vpop.f32.mrf.mxu2  ;;  %v1989_v60 = vpop.f32.mrf.mxu3  ;;  %2456 = vmatpush.bf16.msra.mxu3 %v3333_v54  ;;  %v2029_v63 = vadd.f32 %v4786_v53, %v4687_v9 }
 0x2e4   :  { %v1899_v58 = vpop.f32.mrf.mxu0  ;;  %v1928_v12 = vpop.f32.mrf.mxu1 }
 0x2e5   :  { %v2089_v30 = vmax.f32 %v2041_v29, %v2073_v6  ;;  %v2090_v16 = vmax.f32 %v2042_v18, %v2074_v15  ;;  %v1900_v35 = vadd.f32 %v1899_v58, %v4664_v50  ;;  %v1929_v14 = vadd.f32 %v1928_v12, %v4666_v51 }
 0x2e6   :  { %v2043_v51 = vmax.f32 %v2027_v27, 0.0  ;;  %v2030_v29 = vadd.f32 %v4788_v23, %v4690_v42  ;;  %v2045_v9 = vmax.f32 %v2029_v63, 0.0 }
 0x2e7   :  { %v2105_v62 = vmax.f32 %v2089_v30, %v2090_v16  ;;  %v2006_v5 = vadd.f32 %v1957_v57, %v1900_v35  ;;  %v2007_v45 = vadd.f32 %v1986_v26, %v1929_v14  ;;  %v3323_v57 = vld [vmem:[%s4929_s5 + $0x90] sm:$0xff]  ;;  %v3332_v16 = vld [vmem:[%s4929_s5 + $0xd8] sm:$0xff] }
 0x2e8   :  { %2372 = vmatpush.bf16.msra.mxu2 %v3323_v57  ;;  %v2046_v58 = vmax.f32 %v2030_v29, 0.0  ;;  %2457 = vmatpush.bf16.msra.mxu3 %v3332_v16  ;;  %v2033_v29 = vadd.f32 %v4786_v53, %v4713_v0 }
 0x2e9   :  { %v2059_v7 = vadd.f32 %v4786_v53, %v2006_v5  ;;  %v2060_v50 = vadd.f32 %v4788_v23, %v2007_v45  ;;  %v2031_v45 = vadd.f32 %v4786_v53, %v4697_v38  ;;  %v3331_v38 = vld [vmem:[%s4929_s5 + $0xd0] sm:$0xff] }
 0x2eb   :  { %v2075_v59 = vmax.f32 %v2059_v7, 0.0  ;;  %v2076_v48 = vmax.f32 %v2060_v50, 0.0  ;;  %v1962_v18 = vpop.f32.mrf.mxu2  ;;  %v1991_v2 = vpop.f32.mrf.mxu3  ;;  %v2032_v7 = vadd.f32 %v4788_v23, %v4700_v47 }
 0x2ec   :  { %v1902_v26 = vpop.f32.mrf.mxu0  ;;  %v1931_v24 = vpop.f32.mrf.mxu1  ;;  %2373 = vmatpush.bf16.msra.mxu2 %v3322_v40  ;;  %2458 = vmatpush.bf16.msra.mxu3 %v3331_v38 }
 0x2ed   :  { %v2091_v46 = vmax.f32 %v2043_v51, %v2075_v59  ;;  %v2092_v3 = vmax.f32 %v2044_v25, %v2076_v48  ;;  %v1903_v10 = vadd.f32 %v1902_v26, %v4674_v43  ;;  %v1932_v21 = vadd.f32 %v1931_v24, %v4676_v19 }
 0x2ee   :  { %v2113_v43 = vpack.c.bf16 %v2105_v62, %v2105_v62  ;;  %v2048_v57 = vmax.f32 %v2032_v7, 0.0 }
 0x2ef   :  { %v2106_v56 = vmax.f32 %v2091_v46, %v2092_v3  ;;  %v2008_v6 = vadd.f32 %v1960_v39, %v1903_v10  ;;  %v2009_v15 = vadd.f32 %v1989_v60, %v1932_v21  ;;  %v3321_v39 = vld [vmem:[%s4929_s5 + $0x80] sm:$0xff] }
 0x2f0   :  { %v2140_v60 = vunpack.c.l.b16 %v2113_v43  ;;  %2374 = vmatpush.bf16.msra.mxu2 %v3321_v39 }
 0x2f1   :  { %v2114_v4 = vpack.c.bf16 %v2106_v56, %v2106_v56  ;;  %v2061_v19 = vadd.f32 %v4786_v53, %v2008_v6  ;;  %v2062_v17 = vadd.f32 %v4788_v23, %v2009_v15  ;;  %v2034_v56 = vadd.f32 %v4788_v23, %v4716_v20  ;;  %v3330_v15 = vld [vmem:[%s4929_s5 + $0xc8] sm:$0xff] }
 0x2f2   :  { %2459 = vmatpush.bf16.msra.mxu3 %v3330_v15 }
 0x2f3   :  { %v2141_v12 = vunpack.c.l.b16 %v2114_v4  ;;  %v2077_v42 = vmax.f32 %v2061_v19, 0.0  ;;  %v2078_v30 = vmax.f32 %v2062_v17, 0.0  ;;  %v1965_v59 = vpop.f32.mrf.mxu2  ;;  %v1994_v48 = vpop.f32.mrf.mxu3  ;;  %v2049_v4 = vmax.f32 %v2033_v29, 0.0 }
 0x2f4   :  { %v1904_v35 = vpop.f32.mrf.mxu0  ;;  %v1933_v14 = vpop.f32.mrf.mxu1  ;;  %v2050_v19 = vmax.f32 %v2034_v56, 0.0 }
 0x2f5   :  { %v2093_v27 = vmax.f32 %v2045_v9, %v2077_v42  ;;  %v2094_v55 = vmax.f32 %v2046_v58, %v2078_v30  ;;  %v1905_v62 = vadd.f32 %v1904_v35, %v4682_v22  ;;  %v1934_v5 = vadd.f32 %v1933_v14, %v4684_v49 }
 0x2f6   :  { %v2142_v11 = vpack.c.b16 %v2141_v12, %v2140_v60  ;;  %v2047_v49 = vmax.f32 %v2031_v45, 0.0  ;;  %v3329_v12 = vld [vmem:[%s4929_s5 + $0xc0] sm:$0xff] }
 0x2f7   :  { %v2107_v50 = vmax.f32 %v2093_v27, %v2094_v55  ;;  %v2010_v51 = vadd.f32 %v1962_v18, %v1905_v62  ;;  %v2011_v25 = vadd.f32 %v1991_v2, %v1934_v5  ;;  %2460 = vmatpush.bf16.msra.mxu3 %v3329_v12  ;;  %v2035_v27 = vadd.f32 %v4786_v53, %v4729_v61 }
 0x2f8   :  { %2200 = vmatmul.bf16.vlgmr.msra.gmra.mxu0 %v2142_v11  ;;  %v2036_v62 = vadd.f32 %v4788_v23, %v4732_v1 }
 0x2f9   :  { %v2063_v54 = vadd.f32 %v4786_v53, %v2010_v51  ;;  %v2064_v22 = vadd.f32 %v4788_v23, %v2011_v25  ;;  %v2115_v40 = vpack.c.bf16 %v2107_v50, %v2107_v50  ;;  %v2051_v51 = vmax.f32 %v2035_v27, 0.0 }
 0x2fb   :  { %v2079_v26 = vmax.f32 %v2063_v54, 0.0  ;;  %v2080_v24 = vmax.f32 %v2064_v22, 0.0  ;;  %v1967_v17 = vpop.f32.mrf.mxu2  ;;  %v1996_v9 = vpop.f32.mrf.mxu3  ;;  %v2229_v42 = vunpack.c.l.b16 %v2115_v40 }
 0x2fc   :  { %v1907_v46 = vpop.f32.mrf.mxu0  ;;  %v1936_v47 = vpop.f32.mrf.mxu1 }
 0x2fd   :  { %v2095_v3 = vmax.f32 %v2047_v49, %v2079_v26  ;;  %v2096_v10 = vmax.f32 %v2048_v57, %v2080_v24  ;;  %v1908_v21 = vadd.f32 %v1907_v46, %v4692_v8  ;;  %v1937_v63 = vadd.f32 %v1936_v47, %v4694_v34 }
 0x2fe   :  { %v2037_v26 = vadd.f32 %v4786_v53, %v4751_v52  ;;  %v2038_v24 = vadd.f32 %v4788_v23, %v4754_v33 }
 0x2ff   :  { %v2108_v18 = vmax.f32 %v2095_v3, %v2096_v10  ;;  %v2012_v2 = vadd.f32 %v1965_v59, %v1908_v21  ;;  %v2013_v6 = vadd.f32 %v1994_v48, %v1937_v63 }
 0x300   :  { %v2053_v29 = vmax.f32 %v2037_v26, 0.0  ;;  %v2054_v56 = vmax.f32 %v2038_v24, 0.0 }
 0x301   :  { %v2116_v43 = vpack.c.bf16 %v2108_v18, %v2108_v18  ;;  %v2065_v8 = vadd.f32 %v4786_v53, %v2012_v2  ;;  %v2066_v34 = vadd.f32 %v4788_v23, %v2013_v6 }
 0x303   :  { %v2230_v0 = vunpack.c.l.b16 %v2116_v43  ;;  %v2081_v20 = vmax.f32 %v2065_v8, 0.0  ;;  %v2082_v58 = vmax.f32 %v2066_v34, 0.0  ;;  %v1970_v59 = vpop.f32.mrf.mxu2  ;;  %v1999_v48 = vpop.f32.mrf.mxu3  ;;  %v2039_v8 = vadd.f32 %v4786_v53, %v4775_v36 }
 0x304   :  { %v1909_v30 = vpop.f32.mrf.mxu0  ;;  %v1938_v16 = vpop.f32.mrf.mxu1 }
 0x305   :  { %v2097_v39 = vmax.f32 %v2049_v4, %v2081_v20  ;;  %v2098_v60 = vmax.f32 %v2050_v19, %v2082_v58  ;;  %v1910_v35 = vadd.f32 %v1909_v30, %v4705_v37  ;;  %v1939_v14 = vadd.f32 %v1938_v16, %v4707_v41 }
 0x306   :  { %v2231_v55 = vpack.c.b16 %v2230_v0, %v2229_v42  ;;  %v2052_v37 = vmax.f32 %v2036_v62, 0.0  ;;  %v2040_v0 = vadd.f32 %v4788_v23, %v4778_v28 }
 0x307   :  { %v2109_v5 = vmax.f32 %v2097_v39, %v2098_v60  ;;  %v2014_v45 = vadd.f32 %v1967_v17, %v1910_v35  ;;  %v2015_v11 = vadd.f32 %v1996_v9, %v1939_v14 }
 0x308   :  { %2289 = vmatmul.bf16.vlgmr.msra.gmra.mxu1 %v2231_v55  ;;  %v2056_v42 = vmax.f32 %v2040_v0, 0.0  ;;  %v14_v55 = vstv %s4932_s8 }
 0x309   :  { %v2067_v7 = vadd.f32 %v4786_v53, %v2014_v45  ;;  %v2068_v50 = vadd.f32 %v4788_v23, %v2015_v11  ;;  %v2117_v3 = vpack.c.bf16 %v2109_v5, %v2109_v5  ;;  %15 = vst [vmem:[#allocation2] sm:$0x1] %v14_v55 }
 0x30b   :  { %v2083_v25 = vmax.f32 %v2067_v7, 0.0  ;;  %v2084_v41 = vmax.f32 %v2068_v50, 0.0  ;;  %v2315_v2 = vunpack.c.l.b16 %v2117_v3  ;;  %v1972_v34 = vpop.f32.mrf.mxu2  ;;  %v2001_v4 = vpop.f32.mrf.mxu3 }
 0x30c   :  { %v1912_v54 = vpop.f32.mrf.mxu0  ;;  %v1941_v61 = vpop.f32.mrf.mxu1 }
 0x30d   :  { %v2099_v22 = vmax.f32 %v2051_v51, %v2083_v25  ;;  %v2100_v49 = vmax.f32 %v2052_v37, %v2084_v41  ;;  %v1913_v1 = vadd.f32 %v1912_v54, %v4721_v44  ;;  %v1942_v57 = vadd.f32 %v1941_v61, %v4723_v13  ;;  %v3339_v25 = vld [vmem:[%s4931_s7] ss:$0 sm:$0xff] }
 0x30f   :  { %v2110_v38 = vmax.f32 %v2099_v22, %v2100_v49  ;;  %v2016_v46 = vadd.f32 %v1970_v59, %v1913_v1  ;;  %v2017_v47 = vadd.f32 %v1999_v48, %v1942_v57 }
 0x311   :  { %v2118_v10 = vpack.c.bf16 %v2110_v38, %v2110_v38  ;;  %v2069_v21 = vadd.f32 %v4786_v53, %v2016_v46  ;;  %v2070_v63 = vadd.f32 %v4788_v23, %v2017_v47  ;;  %v3340_v47 = vld [vmem:[#allocation2] ss:$0 sm:$0xff] }
 0x313   :  { %v2316_v44 = vunpack.c.l.b16 %v2118_v10  ;;  %v2085_v18 = vmax.f32 %v2069_v21, 0.0  ;;  %v2086_v13 = vmax.f32 %v2070_v63, 0.0 }
 0x314   :  { %v1914_v6 = vpop.f32.mrf.mxu0  ;;  %v1943_v52 = vpop.f32.mrf.mxu1 }
 0x315   :  { %v2101_v15 = vmax.f32 %v2053_v29, %v2085_v18  ;;  %v2102_v40 = vmax.f32 %v2054_v56, %v2086_v13  ;;  %v1915_v33 = vadd.f32 %v1914_v6, %v4740_v31  ;;  %v1944_v43 = vadd.f32 %v1943_v52, %v4742_v32 }
 0x316   :  { %v2317_v19 = vpack.c.b16 %v2316_v44, %v2315_v2  ;;  %v2055_v31 = vmax.f32 %v2039_v8, 0.0 }
 0x317   :  { %v2111_v17 = vmax.f32 %v2101_v15, %v2102_v40  ;;  %v2018_v9 = vadd.f32 %v1972_v34, %v1915_v33  ;;  %v2019_v20 = vadd.f32 %v2001_v4, %v1944_v43 }
 0x318   :  { %2375 = vmatmul.bf16.vlgmr.msra.gmra.mxu2 %v2317_v19 }
 0x319   :  { %v2071_v58 = vadd.f32 %v4786_v53, %v2018_v9  ;;  %v2072_v12 = vadd.f32 %v4788_v23, %v2019_v20  ;;  %v2119_v39 = vpack.c.bf16 %v2111_v17, %v2111_v17  ;;  %v3338_v23 = vld [vmem:[%s4928_s6] ss:$0 sm:$0xff] }
 0x31b   :  { %v2087_v32 = vmax.f32 %v2071_v58, 0.0  ;;  %v2088_v30 = vmax.f32 %v2072_v12, 0.0  ;;  %v2401_v14 = vunpack.c.l.b16 %v2119_v39 }
 0x31d   :  { %v2103_v16 = vmax.f32 %v2055_v31, %v2087_v32  ;;  %v2104_v36 = vmax.f32 %v2056_v42, %v2088_v30 }
 0x31f   :  { %v2112_v60 = vmax.f32 %v2103_v16, %v2104_v36 }
 0x321   :  { %v2120_v35 = vpack.c.bf16 %v2112_v60, %v2112_v60 }
 0x323   :  { %v2402_v27 = vunpack.c.l.b16 %v2120_v35 }
 0x325   :  { %v2403_v28 = vpack.c.b16 %v2402_v27, %v2401_v14 }
 0x327   :  { %2461 = vmatmul.bf16.vlgmr.msra.gmra.mxu3 %v2403_v28 }
 0x375   :  { %v2201_v53 = vpop.f32.mrf.mxu0 }
 0x376   :  { %v2209_v45 = vadd.f32 %v3338_v23, %v2201_v53 }
 0x37d   :  { %v2203_v50 = vpop.f32.mrf.mxu0 }
 0x37e   :  { %v2210_v59 = vadd.f32 %v3338_v23, %v2203_v50 }
 0x385   :  { %v2290_v62 = vpop.f32.mrf.mxu1 }
 0x386   :  { %v2295_v11 = vadd.f32 %v2290_v62, %v2209_v45 }
 0x38d   :  { %v2292_v41 = vpop.f32.mrf.mxu1 }
 0x38e   :  { %v2296_v61 = vadd.f32 %v2292_v41, %v2210_v59 }
 0x39b   :  { %v2376_v5 = vpop.f32.mrf.mxu2 }
 0x39c   :  { %v2381_v7 = vadd.f32 %v2376_v5, %v2295_v11 }
 0x3a3   :  { %v2378_v54 = vpop.f32.mrf.mxu2 }
 0x3a4   :  { %v2382_v49 = vadd.f32 %v2378_v54, %v2296_v61 }
 0x3aa   :  { %v2462_v51 = vpop.f32.mrf.mxu3 }
 0x3ab   :  { %v2467_v37 = vadd.f32 %v2462_v51, %v2381_v7 }
 0x3ad   :  { %v2469_v48 = vmax.f32 %v2467_v37, 0.0 }
 0x3af   :  { %v2475_v22 = vmul.f32 %v3339_v25, %v2469_v48 }
 0x3b1   :  { %v2478_v1 = vsel %vm2477_vm2, %v2475_v22, 0.0 }
 0x3b2   :  { %2479 = vadd.xlane.f32.xlu0 %v2478_v1  ;;  %v2464_v57 = vpop.f32.mrf.mxu3 }
 0x3b3   :  { %v2468_v26 = vadd.f32 %v2464_v57, %v2382_v49 }
 0x3b5   :  { %v2470_v24 = vmax.f32 %v2468_v26, 0.0 }
 0x3b7   :  { %v2476_v38 = vmul.f32 %v3339_v25, %v2470_v24 }
 0x3b9   :  { %v2481_v46 = vsel %vm2477_vm2, %v2476_v38, 0.0 }
 0x3ba   :  { %2482 = vadd.xlane.f32.xlu0 %v2481_v46 }
 0x425   :  { %v2480_v3 = vpop.xlane.xlu0 %2479 }
 0x426   :  { %v2488_v10 = vadd.f32 %v3340_v47, %v2480_v3 }
 0x428   :  { %2491 = vst.msk [vmem:[%s4933_s9] sm:$0xff] %vm2490_vm3, %v2488_v10 }
 0x42d   :  { %v2483_v21 = vpop.xlane.xlu0 %2482 }
 0x42e   :  { %v2489_v63 = vadd.f32 %v3340_v47, %v2483_v21 }
 0x430   :  { %2492 = vst.msk [vmem:[%s4933_s9 + $0x8] sm:$0xff] %vm2490_vm3, %v2489_v63 }

</bundles_post_ra>
